<compile_context>
chip_gen: v5e
topology: v5e:2x2
jax: 0.10.0
libtpu: 0.0.40
codegen_flags: <defaults>
</compile_context>

<pallas_src>
import jax
import jax.numpy as jnp
from jax.experimental import pallas as pl
from jax.experimental.pallas import tpu as pltpu


# ----------------------------------------------------------------------------
# Packed-parameter slab layout: (PARAM_ROWS, 128) f32, every section 8-row
# aligned, unused rows/lanes are zero so the wide matmuls stay exact.
# ----------------------------------------------------------------------------
_F_PAD = 8     # node-feature lane padding (F <= 8)
_W1 = 0        # rows [  0,   8): W1  (F, 64)    zero-padded to (8, 128)
_B1 = 8        # row    8       : b1  (1, 64)    zero-padded to (1, 128)
_W2 = 16       # rows [ 16, 144): W2  (64, 128)  zero-padded to (128, 128)
_B2 = 144      # row   144      : b2  (1, 128)
_WFC = 152     # rows [152, 280): Wfc (128, 64)  zero-padded to (128, 128)
_BFC = 280     # row   280      : bfc (1, 64)    zero-padded to (1, 128)
_WOUT = 288    # rows [288, 352): Wout(64, 1)    broadcast over 128 lanes
_BOUT = 352    # row   352      : bout           broadcast over 128 lanes
PARAM_ROWS = 360
_LANES = 128


# ----------------------------------------------------------------------------
# Pallas kernel: one tile of B_TILE graph pairs.
#   a_ref    : (1, TR, TR)        per-tile block-diagonal normalized adjacency
#   x_ref    : (1, TR, F_PAD)     stacked node features (zero lane padding)
#   pool_ref : (B_TILE, TR)       fused mean-pool + branch-diff matrix (+-1/N)
#   p_ref    : (PARAM_ROWS, 128)  packed parameters (VMEM-resident)
#   o_ref    : (1, B_TILE, 128)   sigmoid(similarity) broadcast across lanes
#   where TR = B_TILE * 2N
# ----------------------------------------------------------------------------
def _pose_sim_kernel(a_ref, x_ref, pool_ref, p_ref, o_ref):
    a = a_ref[0]                                                  # (TR, TR)
    x = x_ref[0]                                                  # (TR, F_PAD)

    # --- GCNConv1: A @ (X @ W1) + b1, ReLU  (transform first: K=F is tiny) --
    xw = jnp.dot(x, p_ref[_W1:_W1 + _F_PAD, :],
                 preferred_element_type=jnp.float32)              # (TR, 128)
    h = jnp.dot(a, xw, preferred_element_type=jnp.float32)        # (TR, 128)
    h = jnp.maximum(h + p_ref[_B1:_B1 + 1, :], 0.0)
    # TODO(synk): nn.Dropout(p=0.3) is stochastic in train mode; identity
    # (eval-mode) here.

    # --- GCNConv2: (A @ H) @ W2 + b2, ReLU ----------------------------------
    ah = jnp.dot(a, h, preferred_element_type=jnp.float32)        # (TR, 128)
    h = jnp.dot(ah, p_ref[_W2:_W2 + 128, :],
                preferred_element_type=jnp.float32)
    h = jnp.maximum(h + p_ref[_B2:_B2 + 1, :], 0.0)               # (TR, 128)

    # --- Fused mean-pool + branch subtraction (per pair) on the MXU ---------
    # pool[p, :] has +1/N over pair p's first graph rows, -1/N over its second.
    diff = jnp.abs(jnp.dot(pool_ref[...], h,
                           preferred_element_type=jnp.float32))   # (B_TILE,128)

    # --- FC head: Linear(128,64) -> ReLU -> Linear(64,1) -> sigmoid ---------
    d = jnp.dot(diff, p_ref[_WFC:_WFC + 128, :],
                preferred_element_type=jnp.float32)
    d = jnp.maximum(d + p_ref[_BFC:_BFC + 1, :], 0.0)             # (B_TILE,128)
    logit = jnp.dot(d[:, :64], p_ref[_WOUT:_WOUT + 64, :],
                    preferred_element_type=jnp.float32)           # (B_TILE,128)
    o_ref[0] = jax.nn.sigmoid(logit + p_ref[_BOUT:_BOUT + 1, :])


# ----------------------------------------------------------------------------
# Wrapper: batched forward.  All input assembly is jitted (single XLA fusion),
# kernel runs once over a batch-tile grid with a VMEM-resident param slab.
# ----------------------------------------------------------------------------
def _pool_matrix(b_tile, n):
    two_n = 2 * n
    rows = jnp.arange(b_tile, dtype=jnp.int32)[:, None]              # (b_tile,1)
    cols = jnp.arange(b_tile * two_n, dtype=jnp.int32)[None, :]      # (1, TR)
    pair = cols // two_n
    sign = jnp.where((cols % two_n) < n, 1.0, -1.0) / n
    return jnp.where(pair == rows, sign, 0.0).astype(jnp.float32)


@jax.jit
def pose_similarity_gnn_batched(x1, a1, x2, a2, param_slab):
    """x1,x2: (B, N, F); a1,a2: (B, N, N) normalized adjacencies. -> (B,)"""
    b, n, f = x1.shape
    two_n = 2 * n
    assert two_n % 8 == 0, "2*num_nodes must be a multiple of 8"
    assert f <= _F_PAD, "num_features must be <= 8 for this slab layout"

    b_tile = max(1, 256 // two_n)          # >=256 stacked rows per tile (v6e MXU)
    num_tiles = -(-b // b_tile)
    bp = num_tiles * b_tile
    tr = b_tile * two_n
    pad = bp - b

    def padb(z):
        return jnp.pad(z, ((0, pad),) + ((0, 0),) * (z.ndim - 1))

    x1p, x2p, a1p, a2p = padb(x1), padb(x2), padb(a1), padb(a2)

    # Per-pair block-diagonal adjacency (no cross-graph message passing).
    ap = jnp.zeros((bp, two_n, two_n), jnp.float32)
    ap = ap.at[:, :n, :n].set(a1p).at[:, n:, n:].set(a2p)
    # Per-tile block-diagonal over b_tile pairs (no cross-pair message passing).
    ap = ap.reshape(num_tiles, b_tile, two_n, two_n)
    eye = jnp.eye(b_tile, dtype=jnp.float32)
    a_tiles = jnp.einsum("pq,tpij->tpiqj", eye, ap).reshape(num_tiles, tr, tr)

    # Stacked node features, padded only to 8 lanes (not 128).
    xp = jnp.concatenate([x1p, x2p], axis=1)                         # (bp,2N,F)
    x_pad = jnp.zeros((bp, two_n, _F_PAD), jnp.float32).at[..., :f].set(xp)
    x_tiles = x_pad.reshape(num_tiles, tr, _F_PAD)

    pool = _pool_matrix(b_tile, n)                                   # (b_tile,TR)

    out = pl.pallas_call(
        _pose_sim_kernel,
        out_shape=jax.ShapeDtypeStruct((num_tiles, b_tile, _LANES), jnp.float32),
        grid=(num_tiles,),
        in_specs=[
            pl.BlockSpec((1, tr, tr), lambda t: (t, 0, 0)),
            pl.BlockSpec((1, tr, _F_PAD), lambda t: (t, 0, 0)),
            pl.BlockSpec((b_tile, tr), lambda t: (0, 0)),          # VMEM-resident
            pl.BlockSpec((PARAM_ROWS, _LANES), lambda t: (0, 0)),  # VMEM-resident
        ],
        out_specs=pl.BlockSpec((1, b_tile, _LANES), lambda t: (t, 0, 0)),
        compiler_params=pltpu.CompilerParams(
            dimension_semantics=("parallel",)),   # v7x: 2 TCs split the batch
    )(a_tiles, x_tiles, pool, param_slab)

    return out.reshape(bp, _LANES)[:b, 0]


def pose_similarity_gnn(x1, a1, x2, a2, param_slab):
    """Single-pair forward; matches torch: returns shape (1,)."""
    return pose_similarity_gnn_batched(x1[None], a1[None], x2[None], a2[None],
                                       param_slab)


# ----------------------------------------------------------------------------
# Glue (plain JAX, init-time): adjacency normalization & parameter packing.
# ----------------------------------------------------------------------------
def normalized_adjacency(edge_index, num_nodes):
    src, dst = edge_index[0], edge_index[1]            # PyG: edge j -> i
    a = jnp.zeros((num_nodes, num_nodes), jnp.float32)
    a = a.at[dst, src].add(1.0)                        # scatter-add (dup edges count)
    idx = jnp.arange(num_nodes)
    # add_remaining_self_loops: only where no self-loop already exists.
    a = a.at[idx, idx].add(jnp.where(jnp.diag(a) > 0.0, 0.0, 1.0))
    deg = a.sum(axis=1)
    dinv = jnp.where(deg > 0.0, jax.lax.rsqrt(deg), 0.0)
    return dinv[:, None] * a * dinv[None, :]


def init_params(key, num_features):
    ks = jax.random.split(key, 8)

    def u(k, shape, fan_in):
        bound = 1.0 / jnp.sqrt(jnp.float32(fan_in))
        return jax.random.uniform(k, shape, jnp.float32, -bound, bound)

    return {
        "w1":   u(ks[0], (num_features, 64), num_features),   # GCNConv(F, 64)
        "b1":   u(ks[1], (1, 64), num_features),
        "w2":   u(ks[2], (64, 128), 64),                       # GCNConv(64, 128)
        "b2":   u(ks[3], (1, 128), 64),
        "wfc":  u(ks[4], (128, 64), 128),                      # Linear(128, 64)
        "bfc":  u(ks[5], (1, 64), 128),
        "wout": u(ks[6], (64, 1), 64),                         # Linear(64, 1)
        "bout": u(ks[7], (1, 1), 64),
    }


def pack_params(p):
    """Zero-padded, 128-lane-wide parameter slab -> one VMEM DMA, grid-resident."""
    f = p["w1"].shape[0]
    slab = jnp.zeros((PARAM_ROWS, 128), jnp.float32)
    slab = slab.at[_W1:_W1 + f, 0:64].set(p["w1"])
    slab = slab.at[_B1, 0:64].set(p["b1"][0])
    slab = slab.at[_W2:_W2 + 64, 0:128].set(p["w2"])
    slab = slab.at[_B2, 0:128].set(p["b2"][0])
    slab = slab.at[_WFC:_WFC + 128, 0:64].set(p["wfc"])
    slab = slab.at[_BFC, 0:64].set(p["bfc"][0])
    slab = slab.at[_WOUT:_WOUT + 64, :].set(jnp.broadcast_to(p["wout"], (64, 128)))
    slab = slab.at[_BOUT, :].set(jnp.broadcast_to(p["bout"][0], (128,)))
    return slab


if __name__ == "__main__":
    key = jax.random.PRNGKey(0)
    k_x1, k_x2, k_p = jax.random.split(key, 3)

    num_nodes = 8
    num_features = 4
    batch = 32

    # Deterministic edge lists (ring graph, directed both ways), shape (2, E).
    ring_src = jnp.arange(num_nodes)
    ring_dst = (ring_src + 1) % num_nodes
    edge_index1 = jnp.stack([jnp.concatenate([ring_src, ring_dst]),
                             jnp.concatenate([ring_dst, ring_src])]).astype(jnp.int32)
    # Second graph: ring plus two chords.
    chord_src = jnp.array([0, 3], jnp.int32)
    chord_dst = jnp.array([4, 7], jnp.int32)
    edge_index2 = jnp.stack([
        jnp.concatenate([ring_src, ring_dst, chord_src, chord_dst]),
        jnp.concatenate([ring_dst, ring_src, chord_dst, chord_src]),
    ]).astype(jnp.int32)

    a1 = normalized_adjacency(edge_index1, num_nodes)
    a2 = normalized_adjacency(edge_index2, num_nodes)

    params = init_params(k_p, num_features)
    slab = pack_params(params)

    # Batched pairs: same two graph structures, random node features per pair.
    x1 = jax.random.normal(k_x1, (batch, num_nodes, num_features), jnp.float32)
    x2 = jax.random.normal(k_x2, (batch, num_nodes, num_features), jnp.float32)
    a1b = jnp.broadcast_to(a1, (batch, num_nodes, num_nodes))
    a2b = jnp.broadcast_to(a2, (batch, num_nodes, num_nodes))

    sims = pose_similarity_gnn_batched(x1, a1b, x2, a2b, slab)
    jax.block_until_ready(sims)
    assert sims.shape == (batch,)
    assert bool(jnp.isfinite(sims).all())
    assert bool(jnp.all((sims >= 0.0) & (sims <= 1.0)))

    # Pure-JAX reference check (eval-mode, full f32 matmuls).
    def ref_pair(x1_, a1_, x2_, a2_):
        def branch(x, a):
            h = jnp.maximum((a @ x) @ params["w1"] + params["b1"][0], 0.0)
            h = jnp.maximum((a @ h) @ params["w2"] + params["b2"][0], 0.0)
            return h.mean(axis=0)
        diff = jnp.abs(branch(x1_, a1_) - branch(x2_, a2_))
        d = jnp.maximum(diff @ params["wfc"] + params["bfc"][0], 0.0)
        return jax.nn.sigmoid(d @ params["wout"] + params["bout"][0])[0]

    with jax.default_matmul_precision("float32"):
        ref = jax.vmap(ref_pair)(x1, a1b, x2, a2b)
        jax.block_until_ready(ref)
    assert bool(jnp.allclose(sims, ref, atol=1e-3, rtol=1e-3))

    # Single-pair path (matches the torch module's (1,)-shaped output).
    sim1 = pose_similarity_gnn(x1[0], a1, x2[0], a2, slab)
    jax.block_until_ready(sim1)
    assert sim1.shape == (1,)
    assert bool(jnp.allclose(sim1[0], ref[0], atol=1e-3, rtol=1e-3))

    print("KERNEL_OK")
</pallas_src>

<mosaic_0001>
module attributes {stable_mosaic.version = 11 : i64} {
  func.func @_pose_sim_kernel(%arg0: i32, %arg1: memref<1x256x256xf32, #tpu.memory_space<vmem>>, %arg2: memref<1x256x8xf32, #tpu.memory_space<vmem>>, %arg3: memref<16x256xf32, #tpu.memory_space<vmem>>, %arg4: memref<360x128xf32, #tpu.memory_space<vmem>>, %arg5: memref<1x16x128xf32, #tpu.memory_space<vmem>>) attributes {dimension_semantics = [#tpu.dimension_semantics<parallel>], iteration_bounds = array<i64: 2>, scalar_prefetch = 0 : i64, scratch_operands = 0 : i64, tpu.core_type = #tpu.core_type<tc>, window_params = [{transform_indices = @transform_0, window_bounds = array<i64: 1, 256, 256>}, {transform_indices = @transform_1, window_bounds = array<i64: 1, 256, 8>}, {pipeline_mode = #tpu.pipeline_mode<synchronous>, transform_indices = @transform_2, window_bounds = array<i64: 16, 256>}, {pipeline_mode = #tpu.pipeline_mode<synchronous>, transform_indices = @transform_3, window_bounds = array<i64: 360, 128>}, {transform_indices = @transform_4, window_bounds = array<i64: 1, 16, 128>}]} {
    %c0 = arith.constant 0 : index
    %c0_0 = arith.constant 0 : index
    %c0_1 = arith.constant 0 : index
    %0 = vector.load %arg1[%c0, %c0_0, %c0_1] : memref<1x256x256xf32, #tpu.memory_space<vmem>>, vector<1x256x256xf32>
    %1 = vector.shape_cast %0 : vector<1x256x256xf32> to vector<256x256xf32>
    %c0_2 = arith.constant 0 : index
    %c0_3 = arith.constant 0 : index
    %c0_4 = arith.constant 0 : index
    %2 = vector.load %arg2[%c0_2, %c0_3, %c0_4] : memref<1x256x8xf32, #tpu.memory_space<vmem>>, vector<1x256x8xf32>
    %3 = vector.shape_cast %2 : vector<1x256x8xf32> to vector<256x8xf32>
    %c0_5 = arith.constant 0 : index
    %c0_6 = arith.constant 0 : index
    %4 = vector.load %arg4[%c0_5, %c0_6] : memref<360x128xf32, #tpu.memory_space<vmem>>, vector<8x128xf32>
    %cst = arith.constant dense<0.000000e+00> : vector<256x128xf32>
    %5 = tpu.matmul %3, %4, %cst {dimension_numbers = #tpu.dot_dimension_numbers<[1], [0], [0], [1], [0, 0, 1, 1], [], []>} : vector<256x8xf32>, vector<8x128xf32>, vector<256x128xf32> -> vector<256x128xf32>
    %cst_7 = arith.constant dense<0.000000e+00> : vector<256x128xf32>
    %6 = tpu.matmul %1, %5, %cst_7 {dimension_numbers = #tpu.dot_dimension_numbers<[1], [0], [0], [1], [0, 0, 1, 1], [], []>} : vector<256x256xf32>, vector<256x128xf32>, vector<256x128xf32> -> vector<256x128xf32>
    %c8 = arith.constant 8 : index
    %c0_8 = arith.constant 0 : index
    %7 = vector.load %arg4[%c8, %c0_8] : memref<360x128xf32, #tpu.memory_space<vmem>>, vector<1x128xf32>
    %8 = vector.broadcast %7 : vector<1x128xf32> to vector<256x128xf32>
    %9 = arith.addf %6, %8 : vector<256x128xf32>
    %cst_9 = arith.constant 0.000000e+00 : f32
    %10 = vector.broadcast %cst_9 : f32 to vector<256x128xf32>
    %11 = arith.maximumf %9, %10 : vector<256x128xf32>
    %cst_10 = arith.constant dense<0.000000e+00> : vector<256x128xf32>
    %12 = tpu.matmul %1, %11, %cst_10 {dimension_numbers = #tpu.dot_dimension_numbers<[1], [0], [0], [1], [0, 0, 1, 1], [], []>} : vector<256x256xf32>, vector<256x128xf32>, vector<256x128xf32> -> vector<256x128xf32>
    %c16 = arith.constant 16 : index
    %c0_11 = arith.constant 0 : index
    %13 = vector.load %arg4[%c16, %c0_11] : memref<360x128xf32, #tpu.memory_space<vmem>>, vector<128x128xf32>
    %cst_12 = arith.constant dense<0.000000e+00> : vector<256x128xf32>
    %14 = tpu.matmul %12, %13, %cst_12 {dimension_numbers = #tpu.dot_dimension_numbers<[1], [0], [0], [1], [0, 0, 1, 1], [], []>} : vector<256x128xf32>, vector<128x128xf32>, vector<256x128xf32> -> vector<256x128xf32>
    %c144 = arith.constant 144 : index
    %c0_13 = arith.constant 0 : index
    %15 = vector.load %arg4[%c144, %c0_13] : memref<360x128xf32, #tpu.memory_space<vmem>>, vector<1x128xf32>
    %16 = vector.broadcast %15 : vector<1x128xf32> to vector<256x128xf32>
    %17 = arith.addf %14, %16 : vector<256x128xf32>
    %cst_14 = arith.constant 0.000000e+00 : f32
    %18 = vector.broadcast %cst_14 : f32 to vector<256x128xf32>
    %19 = arith.maximumf %17, %18 : vector<256x128xf32>
    %c0_15 = arith.constant 0 : index
    %c0_16 = arith.constant 0 : index
    %20 = vector.load %arg3[%c0_15, %c0_16] : memref<16x256xf32, #tpu.memory_space<vmem>>, vector<16x256xf32>
    %cst_17 = arith.constant dense<0.000000e+00> : vector<16x128xf32>
    %21 = tpu.matmul %20, %19, %cst_17 {dimension_numbers = #tpu.dot_dimension_numbers<[1], [0], [0], [1], [0, 0, 1, 1], [], []>} : vector<16x256xf32>, vector<256x128xf32>, vector<16x128xf32> -> vector<16x128xf32>
    %22 = math.absf %21 : vector<16x128xf32>
    %c152 = arith.constant 152 : index
    %c0_18 = arith.constant 0 : index
    %23 = vector.load %arg4[%c152, %c0_18] : memref<360x128xf32, #tpu.memory_space<vmem>>, vector<128x128xf32>
    %cst_19 = arith.constant dense<0.000000e+00> : vector<16x128xf32>
    %24 = tpu.matmul %22, %23, %cst_19 {dimension_numbers = #tpu.dot_dimension_numbers<[1], [0], [0], [1], [0, 0, 1, 1], [], []>} : vector<16x128xf32>, vector<128x128xf32>, vector<16x128xf32> -> vector<16x128xf32>
    %c280 = arith.constant 280 : index
    %c0_20 = arith.constant 0 : index
    %25 = vector.load %arg4[%c280, %c0_20] : memref<360x128xf32, #tpu.memory_space<vmem>>, vector<1x128xf32>
    %26 = vector.broadcast %25 : vector<1x128xf32> to vector<16x128xf32>
    %27 = arith.addf %24, %26 : vector<16x128xf32>
    %cst_21 = arith.constant 0.000000e+00 : f32
    %28 = vector.broadcast %cst_21 : f32 to vector<16x128xf32>
    %29 = arith.maximumf %27, %28 : vector<16x128xf32>
    %30 = vector.extract_strided_slice %29 {offsets = [0, 0], sizes = [16, 64], strides = [1, 1]} : vector<16x128xf32> to vector<16x64xf32>
    %c288 = arith.constant 288 : index
    %c0_22 = arith.constant 0 : index
    %31 = vector.load %arg4[%c288, %c0_22] : memref<360x128xf32, #tpu.memory_space<vmem>>, vector<64x128xf32>
    %cst_23 = arith.constant dense<0.000000e+00> : vector<16x128xf32>
    %32 = tpu.matmul %30, %31, %cst_23 {dimension_numbers = #tpu.dot_dimension_numbers<[1], [0], [0], [1], [0, 0, 1, 1], [], []>} : vector<16x64xf32>, vector<64x128xf32>, vector<16x128xf32> -> vector<16x128xf32>
    %c352 = arith.constant 352 : index
    %c0_24 = arith.constant 0 : index
    %33 = vector.load %arg4[%c352, %c0_24] : memref<360x128xf32, #tpu.memory_space<vmem>>, vector<1x128xf32>
    %34 = vector.broadcast %33 : vector<1x128xf32> to vector<16x128xf32>
    %35 = arith.addf %32, %34 : vector<16x128xf32>
    %36 = arith.negf %35 : vector<16x128xf32>
    %37 = math.exp %36 : vector<16x128xf32>
    %cst_25 = arith.constant 1.000000e+00 : f32
    %38 = vector.broadcast %cst_25 : f32 to vector<16x128xf32>
    %39 = arith.addf %38, %37 : vector<16x128xf32>
    %40 = arith.divf %38, %39 : vector<16x128xf32>
    %c0_26 = arith.constant 0 : index
    %c0_27 = arith.constant 0 : index
    %c0_28 = arith.constant 0 : index
    %41 = vector.load %arg5[%c0_26, %c0_27, %c0_28] : memref<1x16x128xf32, #tpu.memory_space<vmem>>, vector<1x16x128xf32>
    %42 = vector.shape_cast %41 : vector<1x16x128xf32> to vector<16x128xf32>
    %43 = vector.shape_cast %40 : vector<16x128xf32> to vector<1x16x128xf32>
    tpu.vector_store %arg5[%c0_26, %c0_27, %c0_28], %43 {strides = array<i32>} : memref<1x16x128xf32, #tpu.memory_space<vmem>>, vector<1x16x128xf32>,
    return
  }
  func.func @transform_0(%arg0: i32) -> (i32, i32, i32) {
    %c0_i32 = arith.constant 0 : i32
    %c0_i32_0 = arith.constant 0 : i32
    %c0_i32_1 = arith.constant 0 : i32
    return %arg0, %c0_i32, %c0_i32_0 : i32, i32, i32
  }
  func.func @transform_1(%arg0: i32) -> (i32, i32, i32) {
    %c0_i32 = arith.constant 0 : i32
    %c0_i32_0 = arith.constant 0 : i32
    %c0_i32_1 = arith.constant 0 : i32
    return %arg0, %c0_i32, %c0_i32_0 : i32, i32, i32
  }
  func.func @transform_2(%arg0: i32) -> (i32, i32) {
    %c0_i32 = arith.constant 0 : i32
    %c0_i32_0 = arith.constant 0 : i32
    %c0_i32_1 = arith.constant 0 : i32
    return %c0_i32, %c0_i32_0 : i32, i32
  }
  func.func @transform_3(%arg0: i32) -> (i32, i32) {
    %c0_i32 = arith.constant 0 : i32
    %c0_i32_0 = arith.constant 0 : i32
    %c0_i32_1 = arith.constant 0 : i32
    return %c0_i32, %c0_i32_0 : i32, i32
  }
  func.func @transform_4(%arg0: i32) -> (i32, i32, i32) {
    %c0_i32 = arith.constant 0 : i32
    %c0_i32_0 = arith.constant 0 : i32
    %c0_i32_1 = arith.constant 0 : i32
    return %arg0, %c0_i32, %c0_i32_0 : i32, i32, i32
  }
}

</mosaic_0001>

<bundles_post_ra>
// kernel: pose_similarity_gnn_batched.1
= control target key start
LH: loop header
LB: loop body
LE: loop exit
PB: predicated region body
PF: predicated region fallthrough
CT: control target
= control target key end

     0   :  { %s1538_s15 = smov 0   ;;  %s2308_s0 = inlined_call_operand.vmem [shape: f32[2,256,256], index: 0, kind: input, shape index: {}]   ;;  %s2309_s1 = inlined_call_operand.vmem [shape: f32[2,256,8], index: 1, kind: input, shape index: {}]   ;;  %s2310_s2 = inlined_call_operand.vmem [shape: f32[16,256], index: 2, kind: input, shape index: {}]   ;;  %s2311_s3 = inlined_call_operand.vmem [shape: f32[360,128], index: 3, kind: input, shape index: {}]   ;;  %s2312_s4 = inlined_call_operand.vmem [shape: f32[2,16,128], index: 4, kind: output, shape index: {}]  }
   0x1 LB: > { %s1416_s16 = sadd.s32 4294967295, %s1511_s15   ;;  %p1420_p0 = scmp.ge.s32.totalorder %s1511_s15, 1  ;;  %s1511_s15 = sphi %s1538_s15, %s14_s15  }
   0x2   : > { %p172_p1 = scmp.lt.s32.totalorder %s1511_s15, 3 }
   0x4   : > { %p173_p2 = pnand %p1420_p0, %p172_p1 }
   0x6   : > { %176 = sbr.rel (%p173_p2) target bundleno = 1707 (0x6ab), region = 36 }
   0xb   : > { %v314_v0 = vld [vmem:[%s2311_s3] sm:$0xff]  ;;  %p203_p3 = scmp.lt.s32.totalorder %s1416_s16, 1  ;;  %vm315_vm0 = vcmask 64512   ;;  %vm1279_vm1 = vcmask 523264  }
   0xc   : > { %427 = vmatpush.msra.mxu0 %v314_v0  ;;  %1468 = vmatpush.msra.mxu2 %v314_v0 }
   0xd   : > { %s2458_s16 = smov (!%p203_p3, %s1416_s16), 1 }
   0xe   : > { %s1466_s19 = sshll.u32 %s2458_s16, 8  ;;  %s1465_s23 = sshll.u32 %s2458_s16, 9 }
   0xf   : > { %s1555_s22 = scalar_lea.vmem %s2309_s1, %s1466_s19  ;;  %s1637_s26 = scalar_lea.vmem %s2308_s0, %s1465_s23 }
  0x10   : > { %v282_v1 = vld [vmem:[%s1555_s22] sm:$0xff]  ;;  %v303_v2 = vld [vmem:[%s1555_s22 + $0xa8] sm:$0xff]  ;;  %v304_v4 = vld [vmem:[%s1555_s22 + $0xb0] sm:$0xff]  ;;  %s1467_s27 = sshll.u32 %s2458_s16, 4 }
  0x11   : > { %1427 = vmatmul.msk.f32.vlgmr.msra.gmra.mxu0 %vm315_vm0, %v282_v1  ;;  %1448 = vmatmul.msk.f32.vlgmr.msra.gmra.mxu2 %vm315_vm0, %v303_v2  ;;  %v283_v3 = vld [vmem:[%s1555_s22 + $0x8] sm:$0xff]  ;;  %v284_v5 = vld [vmem:[%s1555_s22 + $0x10] sm:$0xff]  ;;  %v305_v6 = vld [vmem:[%s1555_s22 + $0xb8] sm:$0xff]  ;;  %s217_s30 = scalar_lea.vmem %s2312_s4, %s1467_s27 }
  0x12   : > { %v285_v7 = vld [vmem:[%s1555_s22 + $0x18] sm:$0xff]  ;;  %v306_v8 = vld [vmem:[%s1555_s22 + $0xc0] sm:$0xff]  ;;  %v307_v10 = vld [vmem:[%s1555_s22 + $0xc8] sm:$0xff] }
  0x13   : > { %v286_v9 = vld [vmem:[%s1555_s22 + $0x20] sm:$0xff]  ;;  %v287_v11 = vld [vmem:[%s1555_s22 + $0x28] sm:$0xff]  ;;  %v308_v12 = vld [vmem:[%s1555_s22 + $0xd0] sm:$0xff] }
  0x14   : > { %v288_v13 = vld [vmem:[%s1555_s22 + $0x30] sm:$0xff]  ;;  %v309_v14 = vld [vmem:[%s1555_s22 + $0xd8] sm:$0xff]  ;;  %v310_v16 = vld [vmem:[%s1555_s22 + $0xe0] sm:$0xff] }
  0x15   : > { %v289_v15 = vld [vmem:[%s1555_s22 + $0x38] sm:$0xff]  ;;  %v290_v17 = vld [vmem:[%s1555_s22 + $0x40] sm:$0xff]  ;;  %v311_v18 = vld [vmem:[%s1555_s22 + $0xe8] sm:$0xff] }
  0x16   : > { %v291_v19 = vld [vmem:[%s1555_s22 + $0x48] sm:$0xff]  ;;  %v312_v20 = vld [vmem:[%s1555_s22 + $0xf0] sm:$0xff]  ;;  %v313_v22 = vld [vmem:[%s1555_s22 + $0xf8] sm:$0xff] }
  0x17   : > { %v292_v21 = vld [vmem:[%s1555_s22 + $0x50] sm:$0xff]  ;;  %v293_v23 = vld [vmem:[%s1555_s22 + $0x58] sm:$0xff]  ;;  %v294_v24 = vld [vmem:[%s1555_s22 + $0x60] sm:$0xff] }
  0x18   : > { %v295_v25 = vld [vmem:[%s1555_s22 + $0x68] sm:$0xff]  ;;  %v296_v26 = vld [vmem:[%s1555_s22 + $0x70] sm:$0xff]  ;;  %v297_v27 = vld [vmem:[%s1555_s22 + $0x78] sm:$0xff] }
  0x19   : > { %1428 = vmatmul.msk.f32.gmra.mxu0 %vm315_vm0, %v283_v3  ;;  %1449 = vmatmul.msk.f32.gmra.mxu2 %vm315_vm0, %v304_v4  ;;  %v298_v29 = vld [vmem:[%s1555_s22 + $0x80] sm:$0xff]  ;;  %v299_v32 = vld [vmem:[%s1555_s22 + $0x88] sm:$0xff]  ;;  %v300_v35 = vld [vmem:[%s1555_s22 + $0x90] sm:$0xff] }
  0x1a   : > { %v301_v38 = vld [vmem:[%s1555_s22 + $0x98] sm:$0xff]  ;;  %v302_v41 = vld [vmem:[%s1555_s22 + $0xa0] sm:$0xff]  ;;  %v1648_v1 = vld [vmem:[%s1637_s26 + $0x10] sm:$0xff] }
  0x1b   : > { %v1642_v63 = vld [vmem:[%s1637_s26] sm:$0xff]  ;;  %v1655_v4 = vld [vmem:[%s1637_s26 + $0x8] sm:$0xff] }
  0x1c   : > { %v1652_v3 = vld [vmem:[%s1637_s26 + $0x20] sm:$0xff]  ;;  %2361 = vst [vmem:[#allocation2_spill] sm:$0xff] %v1655_v4 }
  0x21   : > { %1429 = vmatmul.msk.f32.gmra.mxu0 %vm315_vm0, %v284_v5  ;;  %1450 = vmatmul.msk.f32.gmra.mxu2 %vm315_vm0, %v305_v6  ;;  %v1660_v5 = vld [vmem:[%s1637_s26 + $0x30] sm:$0xff]  ;;  %v1663_v6 = vld [vmem:[%s1637_s26 + $0x18] sm:$0xff] }
  0x22   : > { %2362 = vst [vmem:[#allocation3_spill] sm:$0xff] %v1663_v6 }
  0x29   : > { %1430 = vmatmul.msk.f32.gmra.mxu0 %vm315_vm0, %v285_v7  ;;  %1451 = vmatmul.msk.f32.gmra.mxu2 %vm315_vm0, %v306_v8  ;;  %v1668_v7 = vld [vmem:[%s1637_s26 + $0x40] sm:$0xff]  ;;  %v1671_v8 = vld [vmem:[%s1637_s26 + $0x28] sm:$0xff] }
  0x2a   : > { %2363 = vst [vmem:[#allocation4_spill] sm:$0xff] %v1671_v8 }
  0x31   : > { %1431 = vmatmul.msk.f32.gmra.mxu0 %vm315_vm0, %v286_v9  ;;  %1452 = vmatmul.msk.f32.gmra.mxu2 %vm315_vm0, %v307_v10  ;;  %v1676_v9 = vld [vmem:[%s1637_s26 + $0x50] sm:$0xff]  ;;  %v1679_v10 = vld [vmem:[%s1637_s26 + $0x38] sm:$0xff] }
  0x32   : > { %2364 = vst [vmem:[#allocation5_spill] sm:$0xff] %v1679_v10 }
  0x39   : > { %1432 = vmatmul.msk.f32.gmra.mxu0 %vm315_vm0, %v287_v11  ;;  %1453 = vmatmul.msk.f32.gmra.mxu2 %vm315_vm0, %v308_v12  ;;  %v1684_v11 = vld [vmem:[%s1637_s26 + $0x60] sm:$0xff]  ;;  %v1687_v12 = vld [vmem:[%s1637_s26 + $0x48] sm:$0xff] }
  0x3a   : > { %2365 = vst [vmem:[#allocation6_spill] sm:$0xff] %v1687_v12 }
  0x41   : > { %1433 = vmatmul.msk.f32.gmra.mxu0 %vm315_vm0, %v288_v13  ;;  %1454 = vmatmul.msk.f32.gmra.mxu2 %vm315_vm0, %v309_v14  ;;  %v1692_v13 = vld [vmem:[%s1637_s26 + $0x70] sm:$0xff]  ;;  %v1695_v14 = vld [vmem:[%s1637_s26 + $0x58] sm:$0xff] }
  0x42   : > { %2366 = vst [vmem:[#allocation7_spill] sm:$0xff] %v1695_v14 }
  0x49   : > { %1434 = vmatmul.msk.f32.gmra.mxu0 %vm315_vm0, %v289_v15  ;;  %1455 = vmatmul.msk.f32.gmra.mxu2 %vm315_vm0, %v310_v16  ;;  %v1700_v15 = vld [vmem:[%s1637_s26 + $0x80] sm:$0xff]  ;;  %v1703_v16 = vld [vmem:[%s1637_s26 + $0x68] sm:$0xff] }
  0x4a   : > { %2367 = vst [vmem:[#allocation8_spill] sm:$0xff] %v1703_v16 }
  0x51   : > { %1435 = vmatmul.msk.f32.gmra.mxu0 %vm315_vm0, %v290_v17  ;;  %1456 = vmatmul.msk.f32.gmra.mxu2 %vm315_vm0, %v311_v18  ;;  %v1708_v17 = vld [vmem:[%s1637_s26 + $0x90] sm:$0xff]  ;;  %v1711_v18 = vld [vmem:[%s1637_s26 + $0x78] sm:$0xff] }
  0x52   : > { %2368 = vst [vmem:[#allocation9_spill] sm:$0xff] %v1711_v18 }
  0x59   : > { %1436 = vmatmul.msk.f32.gmra.mxu0 %vm315_vm0, %v291_v19  ;;  %1457 = vmatmul.msk.f32.gmra.mxu2 %vm315_vm0, %v312_v20  ;;  %v1716_v19 = vld [vmem:[%s1637_s26 + $0xa0] sm:$0xff]  ;;  %v1719_v20 = vld [vmem:[%s1637_s26 + $0x88] sm:$0xff] }
  0x5a   : > { %2369 = vst [vmem:[#allocation10_spill] sm:$0xff] %v1719_v20 }
  0x61   : > { %1437 = vmatmul.msk.f32.gmra.mxu0 %vm315_vm0, %v292_v21  ;;  %1458 = vmatmul.msk.f32.gmra.mxu2 %vm315_vm0, %v313_v22  ;;  %v1724_v21 = vld [vmem:[%s1637_s26 + $0xb0] sm:$0xff]  ;;  %v1727_v22 = vld [vmem:[%s1637_s26 + $0x98] sm:$0xff] }
  0x62   : > { %2370 = vst [vmem:[#allocation11_spill] sm:$0xff] %v1727_v22 }
  0x69   : > { %1438 = vmatmul.msk.f32.gmra.mxu0 %vm315_vm0, %v293_v23  ;;  %v1732_v23 = vld [vmem:[%s1637_s26 + $0xc0] sm:$0xff] }
  0x71   : > { %1439 = vmatmul.msk.f32.gmra.mxu0 %vm315_vm0, %v294_v24  ;;  %v1735_v24 = vld [vmem:[%s1637_s26 + $0xa8] sm:$0xff] }
  0x72   : > { %2371 = vst [vmem:[#allocation12_spill] sm:$0xff] %v1735_v24 }
  0x79   : > { %1440 = vmatmul.msk.f32.gmra.mxu0 %vm315_vm0, %v295_v25  ;;  %v1740_v25 = vld [vmem:[%s1637_s26 + $0xd0] sm:$0xff] }
  0x81   : > { %1441 = vmatmul.msk.f32.gmra.mxu0 %vm315_vm0, %v296_v26  ;;  %v1743_v26 = vld [vmem:[%s1637_s26 + $0xb8] sm:$0xff] }
  0x82   : > { %2372 = vst [vmem:[#allocation13_spill] sm:$0xff] %v1743_v26 }
  0x89   : > { %1442 = vmatmul.msk.f32.gmra.mxu0 %vm315_vm0, %v297_v27  ;;  %v1748_v27 = vld [vmem:[%s1637_s26 + $0xe0] sm:$0xff] }
  0x8e   : > { %v1611_v28 = vpop.f32.mrf.mxu0 }
  0x91   : > { %1443 = vmatmul.msk.f32.gmra.mxu0 %vm315_vm0, %v298_v29  ;;  %v1756_v29 = vld [vmem:[%s1637_s26 + $0xf0] sm:$0xff] }
  0x94   : > { %v492_v30 = vpop.f32.mrf.mxu2 }
  0x96   : > { %v1615_v31 = vpop.f32.mrf.mxu0 }
  0x99   : > { %1444 = vmatmul.msk.f32.gmra.mxu0 %vm315_vm0, %v299_v32  ;;  %v1766_v32 = vld [vmem:[%s1637_s26 + $0x100] sm:$0xff] }
  0x9a   : > { %2375 = vst [vmem:[#allocation16_spill] sm:$0xff] %v1766_v32 }
  0x9c   : > { %v495_v33 = vpop.f32.mrf.mxu2 }
  0x9e   : > { %v1619_v34 = vpop.f32.mrf.mxu0 }
  0xa1   : > { %1445 = vmatmul.msk.f32.gmra.mxu0 %vm315_vm0, %v300_v35 }
  0xa4   : > { %v498_v36 = vpop.f32.mrf.mxu2 }
  0xa6   : > { %v1623_v37 = vpop.f32.mrf.mxu0 }
  0xa9   : > { %1446 = vmatmul.msk.f32.gmra.mxu0 %vm315_vm0, %v301_v38  ;;  %v1786_v38 = vld [vmem:[%s1637_s26 + $0xf8] sm:$0xff] }
  0xaa   : > { %2380 = vst [vmem:[#allocation21_spill] sm:$0xff] %v1786_v38 }
  0xac   : > { %v501_v39 = vpop.f32.mrf.mxu2 }
  0xae   : > { %v441_v40 = vpop.f32.mrf.mxu0 }
  0xb1   : > { %1447 = vmatmul.msk.f32.gmra.mxu0 %vm315_vm0, %v302_v41  ;;  %v1797_v41 = vld [vmem:[%s1637_s26 + $0x108] sm:$0xff] }
  0xb2   : > { %2382 = vst [vmem:[#allocation23_spill] sm:$0xff] %v1797_v41 }
  0xb4   : > { %v504_v42 = vpop.f32.mrf.mxu2 }
  0xb6   : > { %v444_v43 = vpop.f32.mrf.mxu0 }
  0xbc   : > { %v507_v44 = vpop.f32.mrf.mxu2 }
  0xbe   : > { %v447_v45 = vpop.f32.mrf.mxu0 }
  0xc4   : > { %v510_v46 = vpop.f32.mrf.mxu2 }
  0xc6   : > { %v450_v47 = vpop.f32.mrf.mxu0 }
  0xcc   : > { %v513_v48 = vpop.f32.mrf.mxu2 }
  0xce   : > { %v453_v49 = vpop.f32.mrf.mxu0 }
  0xd4   : > { %v516_v50 = vpop.f32.mrf.mxu2 }
  0xd6   : > { %v456_v51 = vpop.f32.mrf.mxu0 }
  0xdc   : > { %v519_v52 = vpop.f32.mrf.mxu2 }
  0xde   : > { %v459_v53 = vpop.f32.mrf.mxu0 }
  0xe4   : > { %v522_v54 = vpop.f32.mrf.mxu2 }
  0xe5   : > { %640 = vmatpush.msrb.mxu2 %v522_v54 }
  0xe6   : > { %v462_v55 = vpop.f32.mrf.mxu0 }
  0xe7   : > { %641 = vmatpush.msrb.mxu2 %v519_v52  ;;  %v1830_v52 = vld [vmem:[%s1637_s26 + $0x170] sm:$0xff] }
  0xe8   : > { %2387 = vst [vmem:[#allocation28_spill] sm:$0xff] %v1830_v52 }
  0xe9   : > { %642 = vmatpush.msrb.mxu2 %v516_v50 }
  0xeb   : > { %643 = vmatpush.msrb.mxu2 %v513_v48  ;;  %v1818_v48 = vld [vmem:[%s1637_s26 + $0x160] sm:$0xff] }
  0xec   : > { %2385 = vst [vmem:[#allocation26_spill] sm:$0xff] %v1818_v48 }
  0xed   : > { %644 = vmatpush.msrb.mxu2 %v510_v46 }
  0xee   : > { %v465_v56 = vpop.f32.mrf.mxu0 }
  0xef   : > { %645 = vmatpush.msrb.mxu2 %v507_v44  ;;  %v1806_v44 = vld [vmem:[%s1637_s26 + $0x150] sm:$0xff] }
  0xf0   : > { %2383 = vst [vmem:[#allocation24_spill] sm:$0xff] %v1806_v44 }
  0xf1   : > { %646 = vmatpush.msrb.mxu2 %v504_v42 }
  0xf3   : > { %647 = vmatpush.msrb.mxu2 %v501_v39 }
  0xf5   : > { %648 = vmatpush.msrb.mxu2 %v498_v36  ;;  %v1780_v36 = vld [vmem:[%s1637_s26 + $0x110] sm:$0xff] }
  0xf6   : > { %v468_v57 = vpop.f32.mrf.mxu0  ;;  %2378 = vst [vmem:[#allocation19_spill] sm:$0xff] %v1780_v36 }
  0xf7   : > { %649 = vmatpush.msrb.mxu2 %v495_v33  ;;  %v1769_v33 = vld [vmem:[%s1637_s26 + $0x120] sm:$0xff] }
  0xf8   : > { %2376 = vst [vmem:[#allocation17_spill] sm:$0xff] %v1769_v33 }
  0xf9   : > { %650 = vmatpush.msrb.mxu2 %v492_v30  ;;  %v1759_v30 = vld [vmem:[%s1637_s26 + $0xd8] sm:$0xff] }
  0xfa   : > { %2374 = vst [vmem:[#allocation15_spill] sm:$0xff] %v1759_v30 }
  0xfe   : > { %v471_v58 = vpop.f32.mrf.mxu0 }
 0x106   : > { %v474_v59 = vpop.f32.mrf.mxu0 }
 0x107   : > { %527 = vmatpush.msra.mxu1 %v474_v59  ;;  %1469 = vmatpush.msra.mxu3 %v474_v59  ;;  %v1852_v59 = vld [vmem:[%s1637_s26 + $0x190] sm:$0xff] }
 0x108   : > { %2391 = vst [vmem:[#allocation32_spill] sm:$0xff] %v1852_v59 }
 0x109   : > { %528 = vmatpush.msra.mxu1 %v471_v58  ;;  %1470 = vmatpush.msra.mxu3 %v471_v58 }
 0x10b   : > { %529 = vmatpush.msra.mxu1 %v468_v57  ;;  %1471 = vmatpush.msra.mxu3 %v468_v57  ;;  %v1845_v57 = vld [vmem:[%s1637_s26 + $0x148] sm:$0xff] }
 0x10c   : > { %2390 = vst [vmem:[#allocation31_spill] sm:$0xff] %v1845_v57 }
 0x10d   : > { %530 = vmatpush.msra.mxu1 %v465_v56  ;;  %1472 = vmatpush.msra.mxu3 %v465_v56  ;;  %v1842_v56 = vld [vmem:[%s1637_s26 + $0x180] sm:$0xff] }
 0x10e   : > { %v477_v60 = vpop.f32.mrf.mxu0  ;;  %2389 = vst [vmem:[#allocation30_spill] sm:$0xff] %v1842_v56 }
 0x10f   : > { %531 = vmatpush.msra.mxu1 %v462_v55  ;;  %1473 = vmatpush.msra.mxu3 %v462_v55 }
 0x111   : > { %532 = vmatpush.msra.mxu1 %v459_v53  ;;  %1474 = vmatpush.msra.mxu3 %v459_v53  ;;  %v1833_v53 = vld [vmem:[%s1637_s26 + $0x138] sm:$0xff] }
 0x112   : > { %2388 = vst [vmem:[#allocation29_spill] sm:$0xff] %v1833_v53 }
 0x113   : > { %533 = vmatpush.msra.mxu1 %v456_v51  ;;  %1475 = vmatpush.msra.mxu3 %v456_v51 }
 0x115   : > { %534 = vmatpush.msra.mxu1 %v453_v49  ;;  %1476 = vmatpush.msra.mxu3 %v453_v49  ;;  %v1821_v49 = vld [vmem:[%s1637_s26 + $0x128] sm:$0xff] }
 0x116   : > { %v480_v61 = vpop.f32.mrf.mxu0  ;;  %2386 = vst [vmem:[#allocation27_spill] sm:$0xff] %v1821_v49 }
 0x117   : > { %535 = vmatpush.msra.mxu1 %v450_v47  ;;  %1477 = vmatpush.msra.mxu3 %v450_v47 }
 0x119   : > { %536 = vmatpush.msra.mxu1 %v447_v45  ;;  %1478 = vmatpush.msra.mxu3 %v447_v45  ;;  %v1809_v45 = vld [vmem:[%s1637_s26 + $0x118] sm:$0xff] }
 0x11a   : > { %2384 = vst [vmem:[#allocation25_spill] sm:$0xff] %v1809_v45 }
 0x11b   : > { %537 = vmatpush.msra.mxu1 %v444_v43  ;;  %1479 = vmatpush.msra.mxu3 %v444_v43 }
 0x11d   : > { %538 = vmatpush.msra.mxu1 %v441_v40  ;;  %1480 = vmatpush.msra.mxu3 %v441_v40  ;;  %v1794_v40 = vld [vmem:[%s1637_s26 + $0x140] sm:$0xff] }
 0x11e   : > { %v483_v62 = vpop.f32.mrf.mxu0  ;;  %2381 = vst [vmem:[#allocation22_spill] sm:$0xff] %v1794_v40 }
 0x11f   : > { %539 = vmatpush.msra.mxu1 %v1623_v37  ;;  %1481 = vmatpush.msra.mxu3 %v1623_v37  ;;  %v1783_v37 = vld [vmem:[%s1637_s26 + $0x130] sm:$0xff] }
 0x120   : > { %2379 = vst [vmem:[#allocation20_spill] sm:$0xff] %v1783_v37 }
 0x121   : > { %540 = vmatpush.msra.mxu1 %v1619_v34  ;;  %1482 = vmatpush.msra.mxu3 %v1619_v34  ;;  %v1772_v34 = vld [vmem:[%s1637_s26 + $0xe8] sm:$0xff] }
 0x122   : > { %2377 = vst [vmem:[#allocation18_spill] sm:$0xff] %v1772_v34 }
 0x123   : > { %541 = vmatpush.msra.mxu1 %v1615_v31  ;;  %1483 = vmatpush.msra.mxu3 %v1615_v31 }
 0x125   : > { %542 = vmatpush.msra.mxu1 %v1611_v28  ;;  %1484 = vmatpush.msra.mxu3 %v1611_v28  ;;  %v1751_v28 = vld [vmem:[%s1637_s26 + $0xc8] sm:$0xff] }
 0x126   : > { %v486_v0 = vpop.f32.mrf.mxu0  ;;  %543 = vmatmul.f32.vlgmr.msra.gmra.mxu1 %v1642_v63  ;;  %2373 = vst [vmem:[#allocation14_spill] sm:$0xff] %v1751_v28  ;;  %597 = vmatmul.f32.vlgmr.msra.gmra.mxu3 %v1769_v33 }
 0x12e   : > { %v489_v2 = vpop.f32.mrf.mxu0  ;;  %546 = vmatmul.f32.gmra.mxu1 %v1648_v1  ;;  %600 = vmatmul.f32.gmra.mxu3 %v1783_v37 }
 0x12f   : > { %651 = vmatpush.msrb.mxu2 %v489_v2  ;;  %v1867_v2 = vld [vmem:[%s1637_s26 + $0x168] sm:$0xff] }
 0x130   : > { %2394 = vst [vmem:[#allocation35_spill] sm:$0xff] %v1867_v2 }
 0x131   : > { %652 = vmatpush.msrb.mxu2 %v486_v0  ;;  %v1864_v0 = vld [vmem:[%s1637_s26 + $0x1a0] sm:$0xff] }
 0x132   : > { %2393 = vst [vmem:[#allocation34_spill] sm:$0xff] %v1864_v0 }
 0x133   : > { %653 = vmatpush.msrb.mxu2 %v483_v62 }
 0x135   : > { %654 = vmatpush.msrb.mxu2 %v480_v61 }
 0x136   : > { %549 = vmatmul.f32.gmra.mxu1 %v1652_v3  ;;  %603 = vmatmul.f32.gmra.mxu3 %v1794_v40 }
 0x137   : > { %655 = vmatpush.msrb.mxu2 %v477_v60  ;;  %v1855_v60 = vld [vmem:[%s1637_s26 + $0x158] sm:$0xff] }
 0x138   : > { %656 = vmatmul.f32.vlgmr.msrb.gmra.mxu2 %v1655_v4  ;;  %2392 = vst [vmem:[#allocation33_spill] sm:$0xff] %v1855_v60 }
 0x13e   : > { %552 = vmatmul.f32.gmra.mxu1 %v1660_v5  ;;  %606 = vmatmul.f32.gmra.mxu3 %v1806_v44 }
 0x140   : > { %659 = vmatmul.f32.gmra.mxu2 %v1663_v6 }
 0x146   : > { %555 = vmatmul.f32.gmra.mxu1 %v1668_v7  ;;  %609 = vmatmul.f32.gmra.mxu3 %v1818_v48 }
 0x148   : > { %662 = vmatmul.f32.gmra.mxu2 %v1671_v8 }
 0x14e   : > { %558 = vmatmul.f32.gmra.mxu1 %v1676_v9  ;;  %612 = vmatmul.f32.gmra.mxu3 %v1830_v52 }
 0x150   : > { %665 = vmatmul.f32.gmra.mxu2 %v1679_v10 }
 0x156   : > { %561 = vmatmul.f32.gmra.mxu1 %v1684_v11  ;;  %615 = vmatmul.f32.gmra.mxu3 %v1842_v56  ;;  %v1912_v56 = vld [vmem:[%s1637_s26 + $0x1b8] sm:$0xff] }
 0x157   : > { %2403 = vst [vmem:[#allocation44_spill] sm:$0xff] %v1912_v56 }
 0x158   : > { %668 = vmatmul.f32.gmra.mxu2 %v1687_v12 }
 0x15e   : > { %564 = vmatmul.f32.gmra.mxu1 %v1692_v13  ;;  %618 = vmatmul.f32.gmra.mxu3 %v1852_v59  ;;  %v1904_v59 = vld [vmem:[%s1637_s26 + $0x1a8] sm:$0xff] }
 0x15f   : > { %2401 = vst [vmem:[#allocation42_spill] sm:$0xff] %v1904_v59 }
 0x160   : > { %671 = vmatmul.f32.gmra.mxu2 %v1695_v14 }
 0x166   : > { %567 = vmatmul.f32.gmra.mxu1 %v1700_v15  ;;  %621 = vmatmul.f32.gmra.mxu3 %v1864_v0 }
 0x168   : > { %674 = vmatmul.f32.gmra.mxu2 %v1703_v16 }
 0x16e   : > { %570 = vmatmul.f32.gmra.mxu1 %v1708_v17 }
 0x170   : > { %677 = vmatmul.f32.gmra.mxu2 %v1711_v18  ;;  %v1928_v18 = vld [vmem:[%s1637_s26 + $0x1e8] sm:$0xff] }
 0x171   : > { %2407 = vst [vmem:[#allocation48_spill] sm:$0xff] %v1928_v18 }
 0x176   : > { %573 = vmatmul.f32.gmra.mxu1 %v1716_v19 }
 0x178   : > { %680 = vmatmul.f32.gmra.mxu2 %v1719_v20 }
 0x17e   : > { %576 = vmatmul.f32.gmra.mxu1 %v1724_v21 }
 0x180   : > { %683 = vmatmul.f32.gmra.mxu2 %v1727_v22 }
 0x186   : > { %579 = vmatmul.f32.gmra.mxu1 %v1732_v23 }
 0x188   : > { %686 = vmatmul.f32.gmra.mxu2 %v1735_v24  ;;  %v1920_v24 = vld [vmem:[%s1637_s26 + $0x1c8] sm:$0xff] }
 0x189   : > { %2405 = vst [vmem:[#allocation46_spill] sm:$0xff] %v1920_v24 }
 0x18e   : > { %582 = vmatmul.f32.gmra.mxu1 %v1740_v25 }
 0x190   : > { %689 = vmatmul.f32.gmra.mxu2 %v1743_v26  ;;  %v1915_v26 = vld [vmem:[%s1637_s26 + $0x1f0] sm:$0xff] }
 0x191   : > { %2404 = vst [vmem:[#allocation45_spill] sm:$0xff] %v1915_v26 }
 0x196   : > { %585 = vmatmul.f32.gmra.mxu1 %v1748_v27 }
 0x198   : > { %692 = vmatmul.f32.gmra.mxu2 %v1751_v28  ;;  %v1907_v28 = vld [vmem:[%s1637_s26 + $0x1e0] sm:$0xff] }
 0x199   : > { %2402 = vst [vmem:[#allocation43_spill] sm:$0xff] %v1907_v28 }
 0x19e   : > { %588 = vmatmul.f32.gmra.mxu1 %v1756_v29 }
 0x1a0   : > { %695 = vmatmul.f32.gmra.mxu2 %v1759_v30 }
 0x1a3   : > { %v1763_v31 = vpop.f32.mrf.mxu1 }
 0x1a6   : > { %591 = vmatmul.f32.gmra.mxu1 %v1766_v32 }
 0x1a8   : > { %698 = vmatmul.f32.gmra.mxu2 %v1772_v34  ;;  %v1889_v34 = vld [vmem:[%s1637_s26 + $0x188] sm:$0xff] }
 0x1a9   : > { %2398 = vst [vmem:[#allocation39_spill] sm:$0xff] %v1889_v34  ;;  %v1931_v48 = vpop.f32.mrf.mxu3 }
 0x1ab   : > { %v1777_v35 = vpop.f32.mrf.mxu1 }
 0x1ae   : > { %594 = vmatmul.f32.gmra.mxu1 %v1780_v36 }
 0x1b0   : > { %701 = vmatmul.f32.gmra.mxu2 %v1786_v38  ;;  %v1886_v38 = vld [vmem:[%s1637_s26 + $0x1c0] sm:$0xff] }
 0x1b1   : > { %2397 = vst [vmem:[#allocation38_spill] sm:$0xff] %v1886_v38  ;;  %v1946_v10 = vpop.f32.mrf.mxu3 }
 0x1b3   : > { %v1791_v39 = vpop.f32.mrf.mxu1 }
 0x1b8   : > { %704 = vmatmul.f32.gmra.mxu2 %v1797_v41 }
 0x1bb   : > { %v1801_v42 = vpop.f32.mrf.mxu2  ;;  %v1803_v43 = vpop.f32.mrf.mxu1 }
 0x1c0   : > { %707 = vmatmul.f32.gmra.mxu2 %v1809_v45  ;;  %v1879_v45 = vld [vmem:[%s1637_s26 + $0x178] sm:$0xff] }
 0x1c1   : > { %2396 = vst [vmem:[#allocation37_spill] sm:$0xff] %v1879_v45 }
 0x1c3   : > { %v1813_v46 = vpop.f32.mrf.mxu2  ;;  %v1815_v47 = vpop.f32.mrf.mxu1 }
 0x1c8   : > { %710 = vmatmul.f32.gmra.mxu2 %v1821_v49  ;;  %v1876_v49 = vld [vmem:[%s1637_s26 + $0x1b0] sm:$0xff] }
 0x1c9   : > { %2395 = vst [vmem:[#allocation36_spill] sm:$0xff] %v1876_v49  ;;  %624 = vmatmul.f32.gmra.mxu3 %v1876_v49  ;;  %v1896_v49 = vld [vmem:[%s1637_s26 + $0x198] sm:$0xff] }
 0x1ca   : > { %2399 = vst [vmem:[#allocation40_spill] sm:$0xff] %v1896_v49 }
 0x1cb   : > { %v1825_v50 = vpop.f32.mrf.mxu2  ;;  %v1827_v51 = vpop.f32.mrf.mxu1 }
 0x1d0   : > { %713 = vmatmul.f32.gmra.mxu2 %v1833_v53 }
 0x1d1   : > { %627 = vmatmul.f32.gmra.mxu3 %v1886_v38 }
 0x1d3   : > { %v1837_v54 = vpop.f32.mrf.mxu2  ;;  %v1839_v55 = vpop.f32.mrf.mxu1 }
 0x1d8   : > { %716 = vmatmul.f32.gmra.mxu2 %v1845_v57 }
 0x1db   : > { %v1849_v58 = vpop.f32.mrf.mxu2  ;;  %v1857_v61 = vpop.f32.mrf.mxu1 }
 0x1e0   : > { %719 = vmatmul.f32.gmra.mxu2 %v1855_v60 }
 0x1e3   : > { %v1861_v62 = vpop.f32.mrf.mxu2  ;;  %v1870_v57 = vpop.f32.mrf.mxu1 }
 0x1e8   : > { %722 = vmatmul.f32.gmra.mxu2 %v1867_v2 }
 0x1eb   : > { %v1873_v53 = vpop.f32.mrf.mxu2  ;;  %v571_v60 = vpop.f32.mrf.mxu1 }
 0x1f0   : > { %725 = vmatmul.f32.gmra.mxu2 %v1879_v45  ;;  %v1899_v45 = vld [vmem:[%s1637_s26 + $0x1d0] sm:$0xff] }
 0x1f1   : > { %2400 = vst [vmem:[#allocation41_spill] sm:$0xff] %v1899_v45  ;;  %630 = vmatmul.f32.gmra.mxu3 %v1899_v45 }
 0x1f3   : > { %v1883_v41 = vpop.f32.mrf.mxu2  ;;  %v574_v0 = vpop.f32.mrf.mxu1 }
 0x1f8   : > { %728 = vmatmul.f32.gmra.mxu2 %v1889_v34 }
 0x1f9   : > { %633 = vmatmul.f32.gmra.mxu3 %v1907_v28 }
 0x1fb   : > { %v1893_v2 = vpop.f32.mrf.mxu2  ;;  %v577_v38 = vpop.f32.mrf.mxu1 }
 0x200   : > { %731 = vmatmul.f32.gmra.mxu2 %v1896_v49 }
 0x201   : > { %636 = vmatmul.f32.gmra.mxu3 %v1915_v26 }
 0x203   : > { %v684_v30 = vpop.f32.mrf.mxu2  ;;  %v580_v49 = vpop.f32.mrf.mxu1 }
 0x208   : > { %734 = vmatmul.f32.gmra.mxu2 %v1904_v59  ;;  %v1924_v59 = vld [vmem:[%s1637_s26 + $0x1d8] sm:$0xff] }
 0x209   : > { %2406 = vst [vmem:[#allocation47_spill] sm:$0xff] %v1924_v59 }
 0x20b   : > { %v687_v34 = vpop.f32.mrf.mxu2  ;;  %v583_v28 = vpop.f32.mrf.mxu1 }
 0x210   : > { %737 = vmatmul.f32.gmra.mxu2 %v1912_v56  ;;  %v1934_v56 = vld [vmem:[%s1637_s26 + $0x1f8] sm:$0xff] }
 0x211   : > { %2408 = vst [vmem:[#allocation49_spill] sm:$0xff] %v1934_v56 }
 0x213   : > { %v690_v45 = vpop.f32.mrf.mxu2  ;;  %v586_v52 = vpop.f32.mrf.mxu1 }
 0x218   : > { %740 = vmatmul.f32.gmra.mxu2 %v1920_v24  ;;  %v1939_v24 = vld [vmem:[%s2311_s3 + $0x8] ss:$0 sm:$0xff] }
 0x219   : > { %v587_v44 = vadd.f32 %v1939_v24, %v586_v52  ;;  %v584_v14 = vadd.f32 %v1939_v24, %v583_v28  ;;  %v581_v40 = vadd.f32 %v1939_v24, %v580_v49  ;;  %v578_v33 = vadd.f32 %v1939_v24, %v577_v38 }
 0x21a   : > { %v575_v6 = vadd.f32 %v1939_v24, %v574_v0 }
 0x21b   : > { %v693_v22 = vpop.f32.mrf.mxu2  ;;  %v589_v16 = vpop.f32.mrf.mxu1 }
 0x21c   : > { %v694_v52 = vadd.f32 %v693_v22, %v581_v40  ;;  %v1957_v22 = vpop.f32.mrf.mxu3 }
 0x220   : > { %743 = vmatmul.f32.gmra.mxu2 %v1924_v59  ;;  %v590_v59 = vadd.f32 %v1939_v24, %v589_v16  ;;  %v572_v16 = vadd.f32 %v1939_v24, %v571_v60  ;;  %v545_v60 = vadd.f32 %v1939_v24, %v1763_v31 }
 0x222   : > { %v658_v0 = vadd.f32 %v1801_v42, %v545_v60 }
 0x223   : > { %v696_v20 = vpop.f32.mrf.mxu2 }
 0x224   : > { %v697_v8 = vadd.f32 %v696_v20, %v584_v14  ;;  %v566_v14 = vadd.f32 %v1939_v24, %v1857_v61  ;;  %v685_v20 = vadd.f32 %v684_v30, %v572_v16  ;;  %v557_v30 = vadd.f32 %v1939_v24, %v1815_v47 }
 0x225   : > { %v548_v47 = vadd.f32 %v1939_v24, %v1777_v35  ;;  %v753_v31 = vmax.f32 %v658_v0, 0.0 }
 0x226   : > { %v766_v28 = vmax.f32 %v697_v8, 0.0  ;;  %v563_v8 = vadd.f32 %v1939_v24, %v1839_v55  ;;  %v670_v55 = vadd.f32 %v1849_v58, %v557_v30 }
 0x227   : > { %v661_v61 = vadd.f32 %v1813_v46, %v548_v47 }
 0x228   : > { %746 = vmatmul.f32.gmra.mxu2 %v1928_v18  ;;  %v676_v38 = vadd.f32 %v1873_v53, %v563_v8  ;;  %v757_v58 = vmax.f32 %v670_v55, 0.0 }
 0x22b   : > { %v699_v26 = vpop.f32.mrf.mxu2 }
 0x22c   : > { %v700_v12 = vadd.f32 %v699_v26, %v587_v44  ;;  %v688_v26 = vadd.f32 %v687_v34, %v575_v6  ;;  %v765_v44 = vmax.f32 %v694_v52, 0.0  ;;  %v560_v6 = vadd.f32 %v1939_v24, %v1827_v51 }
 0x22d   : > { %v679_v34 = vadd.f32 %v1883_v41, %v566_v14  ;;  %v551_v41 = vadd.f32 %v1939_v24, %v1791_v39 }
 0x22e   : > { %v767_v32 = vmax.f32 %v700_v12, 0.0  ;;  %v673_v49 = vadd.f32 %v1861_v62, %v560_v6 }
 0x22f   : > { %v760_v51 = vmax.f32 %v679_v34, 0.0  ;;  %v664_v39 = vadd.f32 %v1825_v50, %v551_v41 }
 0x230   : > { %749 = vmatmul.f32.gmra.mxu2 %v1934_v56  ;;  %v691_v56 = vadd.f32 %v690_v45, %v578_v33  ;;  %v763_v33 = vmax.f32 %v688_v26, 0.0  ;;  %v554_v45 = vadd.f32 %v1939_v24, %v1803_v43  ;;  %v758_v43 = vmax.f32 %v673_v49, 0.0 }
 0x231   : > { %v755_v35 = vmax.f32 %v664_v39, 0.0 }
 0x232   : > { %v764_v12 = vmax.f32 %v691_v56, 0.0  ;;  %v759_v56 = vmax.f32 %v676_v38, 0.0  ;;  %v667_v53 = vadd.f32 %v1837_v54, %v554_v45  ;;  %v754_v54 = vmax.f32 %v661_v61, 0.0 }
 0x233   : > { %v702_v18 = vpop.f32.mrf.mxu2 }
 0x234   : > { %v703_v37 = vadd.f32 %v702_v18, %v590_v59  ;;  %v569_v18 = vadd.f32 %v1939_v24, %v1870_v57  ;;  %v1976_v57 = vpop.f32.mrf.mxu3  ;;  %v756_v62 = vmax.f32 %v667_v53, 0.0  ;;  %v592_v53 = vpop.f32.mrf.mxu1 }
 0x236   : > { %v768_v36 = vmax.f32 %v703_v37, 0.0 }
 0x238   : > { %785 = vmatpush.msrb.mxu3 %v768_v36  ;;  %v762_v36 = vmax.f32 %v685_v20, 0.0 }
 0x23a   : > { %786 = vmatpush.msrb.mxu3 %v767_v32  ;;  %v682_v32 = vadd.f32 %v1893_v2, %v569_v18 }
 0x23b   : > { %v1951_v4 = vpop.f32.mrf.mxu2 }
 0x23c   : > { %787 = vmatpush.msrb.mxu3 %v766_v28  ;;  %v761_v40 = vmax.f32 %v682_v32, 0.0  ;;  %v1990_v52 = vpop.f32.mrf.mxu3 }
 0x23d   : > { %v611_v39 = vadd.f32 %v1939_v24, %v1990_v52 }
 0x23e   : > { %788 = vmatpush.msrb.mxu3 %v765_v44 }
 0x240   : > { %789 = vmatpush.msrb.mxu3 %v764_v12 }
 0x242   : > { %790 = vmatpush.msrb.mxu3 %v763_v33 }
 0x243   : > { %v1965_v37 = vpop.f32.mrf.mxu2 }
 0x244   : > { %791 = vmatpush.msrb.mxu3 %v762_v36  ;;  %v613_v46 = vpop.f32.mrf.mxu3 }
 0x246   : > { %792 = vmatpush.msrb.mxu3 %v761_v40 }
 0x248   : > { %793 = vmatpush.msrb.mxu3 %v760_v51 }
 0x24a   : > { %794 = vmatpush.msrb.mxu3 %v759_v56 }
 0x24b   : > { %v1981_v59 = vpop.f32.mrf.mxu2 }
 0x24c   : > { %795 = vmatpush.msrb.mxu3 %v758_v43  ;;  %v616_v42 = vpop.f32.mrf.mxu3  ;;  %v614_v43 = vadd.f32 %v1939_v24, %v613_v46 }
 0x24d   : > { %v617_v55 = vadd.f32 %v1939_v24, %v616_v42 }
 0x24e   : > { %796 = vmatpush.msrb.mxu3 %v757_v58 }
 0x250   : > { %797 = vmatpush.msrb.mxu3 %v756_v62  ;;  %v608_v62 = vadd.f32 %v1939_v24, %v1976_v57  ;;  %v599_v57 = vadd.f32 %v1939_v24, %v1931_v48 }
 0x252   : > { %798 = vmatpush.msrb.mxu3 %v755_v35 }
 0x253   : > { %v1988_v2 = vpop.f32.mrf.mxu2 }
 0x254   : > { %799 = vmatpush.msrb.mxu3 %v754_v54  ;;  %v619_v18 = vpop.f32.mrf.mxu3  ;;  %v605_v54 = vadd.f32 %v1939_v24, %v1957_v22 }
 0x255   : > { %v620_v49 = vadd.f32 %v1939_v24, %v619_v18  ;;  %v595_v18 = vpop.f32.mrf.mxu1 }
 0x256   : > { %800 = vmatpush.msrb.mxu3 %v753_v31 }
 0x257   : > { %801 = vmatmul.f32.vlgmr.msrb.gmra.mxu3 %v1642_v63 }
 0x25b   : > { %v1993_v50 = vpop.f32.mrf.mxu2 }
 0x25c   : > { %v622_v63 = vpop.f32.mrf.mxu3 }
 0x25f   : > { %804 = vmatmul.f32.gmra.mxu3 %v1648_v1 }
 0x263   : > { %v1996_v16 = vpop.f32.mrf.mxu2 }
 0x264   : > { %v625_v20 = vpop.f32.mrf.mxu3  ;;  %v721_v52 = vadd.f32 %v1996_v16, %v608_v62  ;;  %v712_v16 = vadd.f32 %v1981_v59, %v599_v57  ;;  %v2410_v59 = vld [vmem:[#allocation16_spill] sm:$0xff]  ;;  %v2437_v57 = vld [vmem:[#allocation38_spill] sm:$0xff] }
 0x267   : > { %807 = vmatmul.f32.gmra.mxu3 %v1652_v3 }
 0x26b   : > { %v1999_v28 = vpop.f32.mrf.mxu2 }
 0x26c   : > { %v628_v12 = vpop.f32.mrf.mxu3  ;;  %v724_v31 = vadd.f32 %v1999_v28, %v611_v39  ;;  %v596_v28 = vadd.f32 %v1939_v24, %v595_v18  ;;  %v1012_v39 = vld [vmem:[%s2311_s3 + $0x18] sm:$0xff] }
 0x26e   : > { %v775_v22 = vmax.f32 %v724_v31, 0.0  ;;  %v2433_v31 = vld [vmem:[#allocation34_spill] sm:$0xff] }
 0x26f   : > { %810 = vmatmul.f32.gmra.mxu3 %v1660_v5 }
 0x273   : > { %v726_v26 = vpop.f32.mrf.mxu2 }
 0x274   : > { %v631_v5 = vpop.f32.mrf.mxu3  ;;  %v727_v0 = vadd.f32 %v726_v26, %v614_v43  ;;  %v718_v26 = vadd.f32 %v1993_v50, %v605_v54  ;;  %v771_v50 = vmax.f32 %v712_v16, 0.0  ;;  %v1013_v43 = vld [vmem:[%s2311_s3 + $0x20] sm:$0xff] }
 0x276   : > { %v776_v42 = vmax.f32 %v727_v0, 0.0  ;;  %v2431_v0 = vld [vmem:[#allocation32_spill] sm:$0xff] }
 0x277   : > { %813 = vmatmul.f32.gmra.mxu3 %v1668_v7 }
 0x27b   : > { %v729_v44 = vpop.f32.mrf.mxu2 }
 0x27c   : > { %v634_v32 = vpop.f32.mrf.mxu3  ;;  %v730_v58 = vadd.f32 %v729_v44, %v617_v55  ;;  %v1016_v55 = vld [vmem:[%s2311_s3 + $0x38] sm:$0xff] }
 0x27e   : > { %v777_v46 = vmax.f32 %v730_v58, 0.0  ;;  %v1011_v58 = vld [vmem:[%s2311_s3 + $0x10] sm:$0xff] }
 0x27f   : > { %816 = vmatmul.f32.gmra.mxu3 %v1676_v9 }
 0x283   : > { %v732_v14 = vpop.f32.mrf.mxu2 }
 0x284   : > { %v637_v33 = vpop.f32.mrf.mxu3  ;;  %v733_v60 = vadd.f32 %v732_v14, %v620_v49  ;;  %v773_v14 = vmax.f32 %v718_v26, 0.0  ;;  %v2427_v49 = vld [vmem:[#allocation12_spill] sm:$0xff] }
 0x285   : > { %v638_v6 = vadd.f32 %v1939_v24, %v637_v33  ;;  %v2421_v33 = vld [vmem:[#allocation8_spill] sm:$0xff] }
 0x286   : > { %v778_v35 = vmax.f32 %v733_v60, 0.0 }
 0x287   : > { %819 = vmatmul.f32.gmra.mxu3 %v1684_v11  ;;  %v635_v11 = vadd.f32 %v1939_v24, %v634_v32  ;;  %v2419_v32 = vld [vmem:[#allocation7_spill] sm:$0xff] }
 0x28b   : > { %v735_v1 = vpop.f32.mrf.mxu2 }
 0x28f   : > { %822 = vmatmul.f32.gmra.mxu3 %v1692_v13  ;;  %v632_v13 = vadd.f32 %v1939_v24, %v631_v5  ;;  %v2416_v5 = vld [vmem:[#allocation20_spill] sm:$0xff] }
 0x293   : > { %v738_v3 = vpop.f32.mrf.mxu2 }
 0x297   : > { %825 = vmatmul.f32.gmra.mxu3 %v1700_v15  ;;  %v629_v15 = vadd.f32 %v1939_v24, %v628_v12  ;;  %v2411_v12 = vld [vmem:[#allocation3_spill] sm:$0xff] }
 0x29b   : > { %v741_v8 = vpop.f32.mrf.mxu2 }
 0x29f   : > { %828 = vmatmul.f32.gmra.mxu3 %v1708_v17  ;;  %v626_v17 = vadd.f32 %v1939_v24, %v625_v20 }
 0x2a1   : > { %v739_v51 = vadd.f32 %v738_v3, %v626_v17  ;;  %v2413_v3 = vld [vmem:[#allocation4_spill] sm:$0xff] }
 0x2a2   : > { %v1023_v17 = vld [vmem:[%s2311_s3 + $0x70] sm:$0xff] }
 0x2a3   : > { %v744_v7 = vpop.f32.mrf.mxu2 }
 0x2a4   : > { %v745_v38 = vadd.f32 %v744_v7, %v632_v13  ;;  %v2418_v7 = vld [vmem:[#allocation22_spill] sm:$0xff]  ;;  %v2424_v13 = vld [vmem:[#allocation28_spill] sm:$0xff] }
 0x2a6   : > { %v782_v41 = vmax.f32 %v745_v38, 0.0  ;;  %v2426_v38 = vld [vmem:[#allocation11_spill] sm:$0xff] }
 0x2a7   : > { %831 = vmatmul.f32.gmra.mxu3 %v1716_v19  ;;  %v623_v19 = vadd.f32 %v1939_v24, %v622_v63  ;;  %v774_v63 = vmax.f32 %v721_v52, 0.0  ;;  %v2435_v52 = vld [vmem:[#allocation36_spill] sm:$0xff] }
 0x2a9   : > { %v736_v56 = vadd.f32 %v735_v1, %v623_v19  ;;  %v1021_v19 = vld [vmem:[%s2311_s3 + $0x60] sm:$0xff] }
 0x2ab   : > { %v747_v9 = vpop.f32.mrf.mxu2  ;;  %v779_v61 = vmax.f32 %v736_v56, 0.0  ;;  %v1015_v56 = vld [vmem:[%s2311_s3 + $0x30] sm:$0xff] }
 0x2ac   : > { %v748_v36 = vadd.f32 %v747_v9, %v635_v11  ;;  %v2420_v9 = vld [vmem:[#allocation24_spill] sm:$0xff]  ;;  %v2422_v11 = vld [vmem:[#allocation26_spill] sm:$0xff] }
 0x2ae   : > { %v783_v45 = vmax.f32 %v748_v36, 0.0  ;;  %v1025_v36 = vld [vmem:[%s2311_s3 + $0x80] sm:$0xff] }
 0x2af   : > { %834 = vmatmul.f32.gmra.mxu3 %v1724_v21  ;;  %v742_v21 = vadd.f32 %v741_v8, %v629_v15  ;;  %v2417_v8 = vld [vmem:[#allocation6_spill] sm:$0xff]  ;;  %v1026_v15 = vld [vmem:[%s2311_s3 + $0x88] sm:$0xff] }
 0x2b0   : > { %1029 = vmatpush.msrb.mxu1 %v1026_v15 }
 0x2b1   : > { %v781_v47 = vmax.f32 %v742_v21, 0.0  ;;  %v1020_v21 = vld [vmem:[%s2311_s3 + $0x58] sm:$0xff] }
 0x2b2   : > { %1030 = vmatpush.msrb.mxu1 %v1025_v36 }
 0x2b3   : > { %v750_v34 = vpop.f32.mrf.mxu2 }
 0x2b4   : > { %v751_v30 = vadd.f32 %v750_v34, %v638_v6  ;;  %v2423_v6 = vld [vmem:[#allocation9_spill] sm:$0xff]  ;;  %v2425_v34 = vld [vmem:[#allocation10_spill] sm:$0xff] }
 0x2b6   : > { %v784_v40 = vmax.f32 %v751_v30, 0.0  ;;  %v1024_v30 = vld [vmem:[%s2311_s3 + $0x78] sm:$0xff] }
 0x2b7   : > { %837 = vmatmul.f32.gmra.mxu3 %v1732_v23  ;;  %v780_v23 = vmax.f32 %v739_v51, 0.0  ;;  %1031 = vmatpush.msrb.mxu1 %v1024_v30  ;;  %v1018_v51 = vld [vmem:[%s2311_s3 + $0x48] sm:$0xff]  ;;  %v2448_v30 = vld [vmem:[#allocation37_spill] sm:$0xff] }
 0x2b8   : > { %898 = vmatpush.msrb.mxu0 %v784_v40  ;;  %v1022_v40 = vld [vmem:[%s2311_s3 + $0x68] sm:$0xff] }
 0x2b9   : > { %1032 = vmatpush.msrb.mxu1 %v1023_v17 }
 0x2ba   : > { %899 = vmatpush.msrb.mxu0 %v783_v45  ;;  %v1019_v45 = vld [vmem:[%s2311_s3 + $0x50] sm:$0xff] }
 0x2bb   : > { %1033 = vmatpush.msrb.mxu1 %v1022_v40 }
 0x2bc   : > { %900 = vmatpush.msrb.mxu0 %v782_v41  ;;  %v1017_v41 = vld [vmem:[%s2311_s3 + $0x40] sm:$0xff] }
 0x2bd   : > { %1034 = vmatpush.msrb.mxu1 %v1021_v19  ;;  %v2449_v19 = vld [vmem:[#allocation39_spill] sm:$0xff] }
 0x2be   : > { %901 = vmatpush.msrb.mxu0 %v781_v47  ;;  %v2428_v47 = vld [vmem:[#allocation13_spill] sm:$0xff] }
 0x2bf   : > { %840 = vmatmul.f32.gmra.mxu3 %v1740_v25  ;;  %v602_v25 = vadd.f32 %v1939_v24, %v1946_v10  ;;  %v593_v10 = vadd.f32 %v1939_v24, %v592_v53  ;;  %v2409_v24 = vld [vmem:[#allocation2_spill] sm:$0xff]  ;;  %1035 = vmatpush.msrb.mxu1 %v1020_v21  ;;  %v1014_v53 = vld [vmem:[%s2311_s3 + $0x28] sm:$0xff] }
 0x2c0   : > { %902 = vmatpush.msrb.mxu0 %v780_v23  ;;  %v2429_v23 = vld [vmem:[#allocation30_spill] sm:$0xff] }
 0x2c1   : > { %v715_v44 = vadd.f32 %v1988_v2, %v602_v25  ;;  %v706_v48 = vadd.f32 %v1951_v4, %v593_v10  ;;  %v2415_v4 = vld [vmem:[#allocation5_spill] sm:$0xff]  ;;  %1036 = vmatpush.msrb.mxu1 %v1019_v45 }
 0x2c2   : > { %903 = vmatpush.msrb.mxu0 %v779_v61  ;;  %v2430_v61 = vld [vmem:[#allocation14_spill] sm:$0xff] }
 0x2c3   : > { %v772_v20 = vmax.f32 %v715_v44, 0.0  ;;  %v769_v2 = vmax.f32 %v706_v48, 0.0  ;;  %1037 = vmatpush.msrb.mxu1 %v1018_v51  ;;  %v2450_v51 = vld [vmem:[#allocation40_spill] sm:$0xff] }
 0x2c4   : > { %904 = vmatpush.msrb.mxu0 %v778_v35  ;;  %v2432_v35 = vld [vmem:[#allocation15_spill] sm:$0xff] }
 0x2c5   : > { %1038 = vmatpush.msrb.mxu1 %v1017_v41 }
 0x2c6   : > { %905 = vmatpush.msrb.mxu0 %v777_v46  ;;  %v2434_v46 = vld [vmem:[#allocation18_spill] sm:$0xff] }
 0x2c7   : > { %843 = vmatmul.f32.gmra.mxu3 %v1748_v27  ;;  %v709_v27 = vadd.f32 %v1965_v37, %v596_v28  ;;  %v2412_v37 = vld [vmem:[#allocation19_spill] sm:$0xff]  ;;  %1039 = vmatpush.msrb.mxu1 %v1016_v55 }
 0x2c8   : > { %906 = vmatpush.msrb.mxu0 %v776_v42  ;;  %v2436_v42 = vld [vmem:[#allocation21_spill] sm:$0xff]  ;;  %v2438_v28 = vld [vmem:[#allocation23_spill] sm:$0xff] }
 0x2c9   : > { %v770_v1 = vmax.f32 %v709_v27, 0.0  ;;  %1040 = vmatpush.msrb.mxu1 %v1015_v56 }
 0x2ca   : > { %907 = vmatpush.msrb.mxu0 %v775_v22 }
 0x2cb   : > { %1041 = vmatpush.msrb.mxu1 %v1014_v53 }
 0x2cc   : > { %908 = vmatpush.msrb.mxu0 %v774_v63  ;;  %v2439_v63 = vld [vmem:[#allocation41_spill] sm:$0xff] }
 0x2cd   : > { %1042 = vmatpush.msrb.mxu1 %v1013_v43 }
 0x2ce   : > { %909 = vmatpush.msrb.mxu0 %v773_v14  ;;  %v2440_v14 = vld [vmem:[#allocation25_spill] sm:$0xff] }
 0x2cf   : > { %846 = vmatmul.f32.gmra.mxu3 %v1756_v29  ;;  %v2414_v29 = vld [vmem:[#allocation17_spill] sm:$0xff]  ;;  %1043 = vmatpush.msrb.mxu1 %v1012_v39 }
 0x2d0   : > { %910 = vmatpush.msrb.mxu0 %v772_v20  ;;  %v2441_v20 = vld [vmem:[#allocation43_spill] sm:$0xff] }
 0x2d1   : > { %1044 = vmatpush.msrb.mxu1 %v1011_v58 }
 0x2d2   : > { %911 = vmatpush.msrb.mxu0 %v771_v50 }
 0x2d4   : > { %912 = vmatpush.msrb.mxu0 %v770_v1  ;;  %v2442_v1 = vld [vmem:[#allocation27_spill] sm:$0xff] }
 0x2d6   : > { %913 = vmatpush.msrb.mxu0 %v769_v2 }
 0x2d7   : > { %914 = vmatmul.f32.vlgmr.msrb.gmra.mxu0 %v2409_v24  ;;  %849 = vmatmul.f32.gmra.mxu3 %v2410_v59  ;;  %v2443_v24 = vld [vmem:[#allocation45_spill] sm:$0xff] }
 0x2da   : > { %v802_v60 = vpop.f32.mrf.mxu3 }
 0x2df   : > { %917 = vmatmul.f32.gmra.mxu0 %v2411_v12  ;;  %852 = vmatmul.f32.gmra.mxu3 %v2412_v37  ;;  %v2444_v37 = vld [vmem:[#allocation29_spill] sm:$0xff] }
 0x2e2   : > { %v805_v62 = vpop.f32.mrf.mxu3 }
 0x2e7   : > { %920 = vmatmul.f32.gmra.mxu0 %v2413_v3  ;;  %855 = vmatmul.f32.gmra.mxu3 %v2414_v29 }
 0x2ea   : > { %v808_v54 = vpop.f32.mrf.mxu3 }
 0x2ef   : > { %923 = vmatmul.f32.gmra.mxu0 %v2415_v4  ;;  %858 = vmatmul.f32.gmra.mxu3 %v2416_v5  ;;  %v2445_v5 = vld [vmem:[#allocation31_spill] sm:$0xff] }
 0x2f2   : > { %v811_v25 = vpop.f32.mrf.mxu3 }
 0x2f7   : > { %926 = vmatmul.f32.gmra.mxu0 %v2417_v8  ;;  %861 = vmatmul.f32.gmra.mxu3 %v2418_v7 }
 0x2fa   : > { %v814_v18 = vpop.f32.mrf.mxu3 }
 0x2ff   : > { %929 = vmatmul.f32.gmra.mxu0 %v2419_v32  ;;  %864 = vmatmul.f32.gmra.mxu3 %v2420_v9  ;;  %v2446_v9 = vld [vmem:[#allocation33_spill] sm:$0xff] }
 0x302   : > { %v817_v44 = vpop.f32.mrf.mxu3 }
 0x307   : > { %932 = vmatmul.f32.gmra.mxu0 %v2421_v33  ;;  %867 = vmatmul.f32.gmra.mxu3 %v2422_v11 }
 0x30a   : > { %v820_v27 = vpop.f32.mrf.mxu3 }
 0x30f   : > { %935 = vmatmul.f32.gmra.mxu0 %v2423_v6  ;;  %870 = vmatmul.f32.gmra.mxu3 %v2424_v13  ;;  %v2447_v13 = vld [vmem:[#allocation35_spill] sm:$0xff] }
 0x312   : > { %v823_v2 = vpop.f32.mrf.mxu3 }
 0x317   : > { %938 = vmatmul.f32.gmra.mxu0 %v2425_v34  ;;  %873 = vmatmul.f32.gmra.mxu3 %v2429_v23  ;;  %v2452_v23 = vld [vmem:[#allocation44_spill] sm:$0xff] }
 0x31a   : > { %v826_v3 = vpop.f32.mrf.mxu3 }
 0x31f   : > { %941 = vmatmul.f32.gmra.mxu0 %v2426_v38  ;;  %876 = vmatmul.f32.gmra.mxu3 %v2431_v0 }
 0x322   : > { %v829_v8 = vpop.f32.mrf.mxu3 }
 0x327   : > { %944 = vmatmul.f32.gmra.mxu0 %v2427_v49  ;;  %879 = vmatmul.f32.gmra.mxu3 %v2433_v31  ;;  %v2454_v31 = vld [vmem:[#allocation47_spill] sm:$0xff] }
 0x32a   : > { %v832_v33 = vpop.f32.mrf.mxu3 }
 0x32f   : > { %947 = vmatmul.f32.gmra.mxu0 %v2428_v47  ;;  %882 = vmatmul.f32.gmra.mxu3 %v2435_v52  ;;  %v2451_v47 = vld [vmem:[#allocation42_spill] sm:$0xff]  ;;  %v2455_v52 = vld [vmem:[#allocation48_spill] sm:$0xff] }
 0x332   : > { %v835_v34 = vpop.f32.mrf.mxu3 }
 0x337   : > { %950 = vmatmul.f32.gmra.mxu0 %v2430_v61  ;;  %885 = vmatmul.f32.gmra.mxu3 %v2437_v57 }
 0x33a   : > { %v838_v17 = vpop.f32.mrf.mxu3 }
 0x33f   : > { %953 = vmatmul.f32.gmra.mxu0 %v2432_v35  ;;  %888 = vmatmul.f32.gmra.mxu3 %v2439_v63 }
 0x342   : > { %v841_v21 = vpop.f32.mrf.mxu3 }
 0x347   : > { %956 = vmatmul.f32.gmra.mxu0 %v2434_v46  ;;  %891 = vmatmul.f32.gmra.mxu3 %v2441_v20 }
 0x34a   : > { %v844_v41 = vpop.f32.mrf.mxu3 }
 0x34f   : > { %959 = vmatmul.f32.gmra.mxu0 %v2436_v42  ;;  %894 = vmatmul.f32.gmra.mxu3 %v2443_v24 }
 0x352   : > { %v847_v53 = vpop.f32.mrf.mxu3 }
 0x354   : > { %v915_v26 = vpop.f32.mrf.mxu0 }
 0x355   : > { %v916_v22 = vadd.f32 %v915_v26, %v802_v60  ;;  %v2456_v26 = vld [vmem:[#allocation49_spill] sm:$0xff] }
 0x357   : > { %962 = vmatmul.f32.gmra.mxu0 %v2438_v28  ;;  %1045 = vmatmul.f32.vlgmr.msrb.gmra.mxu1 %v916_v22 }
 0x35a   : > { %v850_v39 = vpop.f32.mrf.mxu3 }
 0x35c   : > { %v918_v10 = vpop.f32.mrf.mxu0 }
 0x35d   : > { %v919_v16 = vadd.f32 %v918_v10, %v805_v62  ;;  %v2453_v62 = vld [vmem:[#allocation46_spill] sm:$0xff] }
 0x35f   : > { %965 = vmatmul.f32.gmra.mxu0 %v2440_v14  ;;  %1048 = vmatmul.f32.gmra.mxu1 %v919_v16 }
 0x364   : > { %v921_v48 = vpop.f32.mrf.mxu0 }
 0x365   : > { %v922_v50 = vadd.f32 %v921_v48, %v808_v54  ;;  %v853_v54 = vpop.f32.mrf.mxu3 }
 0x367   : > { %968 = vmatmul.f32.gmra.mxu0 %v2442_v1  ;;  %1051 = vmatmul.f32.gmra.mxu1 %v922_v50 }
 0x36c   : > { %v924_v59 = vpop.f32.mrf.mxu0 }
 0x36d   : > { %v925_v12 = vadd.f32 %v924_v59, %v811_v25  ;;  %v856_v42 = vpop.f32.mrf.mxu3 }
 0x36f   : > { %971 = vmatmul.f32.gmra.mxu0 %v2444_v37  ;;  %1054 = vmatmul.f32.gmra.mxu1 %v925_v12 }
 0x374   : > { %v927_v29 = vpop.f32.mrf.mxu0 }
 0x375   : > { %v928_v4 = vadd.f32 %v927_v29, %v814_v18  ;;  %v859_v22 = vpop.f32.mrf.mxu3 }
 0x377   : > { %974 = vmatmul.f32.gmra.mxu0 %v2445_v5  ;;  %1057 = vmatmul.f32.gmra.mxu1 %v928_v4 }
 0x37c   : > { %v930_v7 = vpop.f32.mrf.mxu0 }
 0x37d   : > { %v931_v32 = vadd.f32 %v930_v7, %v817_v44  ;;  %v862_v10 = vpop.f32.mrf.mxu3 }
 0x37f   : > { %977 = vmatmul.f32.gmra.mxu0 %v2446_v9  ;;  %1060 = vmatmul.f32.gmra.mxu1 %v931_v32 }
 0x384   : > { %v933_v11 = vpop.f32.mrf.mxu0 }
 0x385   : > { %v934_v6 = vadd.f32 %v933_v11, %v820_v27  ;;  %v865_v1 = vpop.f32.mrf.mxu3 }
 0x387   : > { %980 = vmatmul.f32.gmra.mxu0 %v2447_v13  ;;  %1063 = vmatmul.f32.gmra.mxu1 %v934_v6 }
 0x38c   : > { %v936_v15 = vpop.f32.mrf.mxu0 }
 0x38d   : > { %v937_v36 = vadd.f32 %v936_v15, %v823_v2  ;;  %v868_v12 = vpop.f32.mrf.mxu3 }
 0x38f   : > { %983 = vmatmul.f32.gmra.mxu0 %v2448_v30  ;;  %1066 = vmatmul.f32.gmra.mxu1 %v937_v36 }
 0x394   : > { %v939_v38 = vpop.f32.mrf.mxu0 }
 0x395   : > { %v940_v40 = vadd.f32 %v939_v38, %v826_v3  ;;  %v871_v4 = vpop.f32.mrf.mxu3 }
 0x397   : > { %986 = vmatmul.f32.gmra.mxu0 %v2449_v19  ;;  %1069 = vmatmul.f32.gmra.mxu1 %v940_v40 }
 0x39c   : > { %v942_v45 = vpop.f32.mrf.mxu0 }
 0x39d   : > { %v943_v49 = vadd.f32 %v942_v45, %v829_v8  ;;  %v874_v32 = vpop.f32.mrf.mxu3 }
 0x39f   : > { %989 = vmatmul.f32.gmra.mxu0 %v2450_v51  ;;  %1072 = vmatmul.f32.gmra.mxu1 %v943_v49 }
 0x3a4   : > { %v945_v55 = vpop.f32.mrf.mxu0 }
 0x3a5   : > { %v946_v56 = vadd.f32 %v945_v55, %v832_v33  ;;  %v877_v15 = vpop.f32.mrf.mxu3 }
 0x3a7   : > { %992 = vmatmul.f32.gmra.mxu0 %v2451_v47  ;;  %1075 = vmatmul.f32.gmra.mxu1 %v946_v56 }
 0x3ac   : > { %v948_v43 = vpop.f32.mrf.mxu0 }
 0x3ad   : > { %v949_v60 = vadd.f32 %v948_v43, %v835_v34  ;;  %v880_v38 = vpop.f32.mrf.mxu3 }
 0x3af   : > { %995 = vmatmul.f32.gmra.mxu0 %v2452_v23  ;;  %1078 = vmatmul.f32.gmra.mxu1 %v949_v60 }
 0x3b4   : > { %v951_v58 = vpop.f32.mrf.mxu0 }
 0x3b5   : > { %v952_v61 = vadd.f32 %v951_v58, %v838_v17  ;;  %v883_v45 = vpop.f32.mrf.mxu3 }
 0x3b7   : > { %998 = vmatmul.f32.gmra.mxu0 %v2453_v62  ;;  %1081 = vmatmul.f32.gmra.mxu1 %v952_v61 }
 0x3bc   : > { %v954_v0 = vpop.f32.mrf.mxu0 }
 0x3bd   : > { %v955_v35 = vadd.f32 %v954_v0, %v841_v21  ;;  %v886_v55 = vpop.f32.mrf.mxu3 }
 0x3bf   : > { %1001 = vmatmul.f32.gmra.mxu0 %v2454_v31  ;;  %1084 = vmatmul.f32.gmra.mxu1 %v955_v35 }
 0x3c4   : > { %v957_v46 = vpop.f32.mrf.mxu0 }
 0x3c5   : > { %v958_v25 = vadd.f32 %v957_v46, %v844_v41 }
 0x3c7   : > { %1004 = vmatmul.f32.gmra.mxu0 %v2455_v52  ;;  %1087 = vmatmul.f32.gmra.mxu1 %v958_v25  ;;  %v2157_v25 = vld [vmem:[%s2311_s3 + $0x90] ss:$0 sm:$0xff] }
 0x3cc   : > { %v960_v18 = vpop.f32.mrf.mxu0 }
 0x3cd   : > { %v961_v57 = vadd.f32 %v960_v18, %v847_v53 }
 0x3cf   : > { %1007 = vmatmul.f32.gmra.mxu0 %v2456_v26  ;;  %1090 = vmatmul.f32.gmra.mxu1 %v961_v57 }
 0x3d4   : > { %v963_v28 = vpop.f32.mrf.mxu0  ;;  %v2138_v44 = vpop.f32.mrf.mxu1 }
 0x3d5   : > { %v964_v63 = vadd.f32 %v963_v28, %v850_v39  ;;  %v889_v39 = vpop.f32.mrf.mxu3 }
 0x3d7   : > { %1093 = vmatmul.f32.gmra.mxu1 %v964_v63 }
 0x3dc   : > { %v966_v16 = vpop.f32.mrf.mxu0  ;;  %v2140_v14 = vpop.f32.mrf.mxu1 }
 0x3dd   : > { %v967_v27 = vadd.f32 %v966_v16, %v853_v54  ;;  %v892_v0 = vpop.f32.mrf.mxu3 }
 0x3df   : > { %1096 = vmatmul.f32.gmra.mxu1 %v967_v27 }
 0x3e4   : > { %v969_v20 = vpop.f32.mrf.mxu0  ;;  %v2142_v48 = vpop.f32.mrf.mxu1 }
 0x3e5   : > { %v970_v50 = vadd.f32 %v969_v20, %v856_v42  ;;  %v895_v46 = vpop.f32.mrf.mxu3 }
 0x3e7   : > { %1099 = vmatmul.f32.gmra.mxu1 %v970_v50 }
 0x3ec   : > { %v972_v2 = vpop.f32.mrf.mxu0  ;;  %v2144_v24 = vpop.f32.mrf.mxu1 }
 0x3ed   : > { %v973_v59 = vadd.f32 %v972_v2, %v859_v22 }
 0x3ef   : > { %1102 = vmatmul.f32.gmra.mxu1 %v973_v59 }
 0x3f4   : > { %v975_v37 = vpop.f32.mrf.mxu0  ;;  %v2146_v3 = vpop.f32.mrf.mxu1 }
 0x3f5   : > { %v976_v29 = vadd.f32 %v975_v37, %v862_v10 }
 0x3f7   : > { %1105 = vmatmul.f32.gmra.mxu1 %v976_v29 }
 0x3fc   : > { %v978_v5 = vpop.f32.mrf.mxu0  ;;  %v2148_v8 = vpop.f32.mrf.mxu1 }
 0x3fd   : > { %v979_v7 = vadd.f32 %v978_v5, %v865_v1 }
 0x3ff   : > { %1108 = vmatmul.f32.gmra.mxu1 %v979_v7 }
 0x404   : > { %v981_v9 = vpop.f32.mrf.mxu0  ;;  %v2150_v33 = vpop.f32.mrf.mxu1 }
 0x405   : > { %v982_v11 = vadd.f32 %v981_v9, %v868_v12  ;;  %v1065_v7 = vadd.f32 %v2157_v25, %v2150_v33  ;;  %v1062_v9 = vadd.f32 %v2157_v25, %v2148_v8  ;;  %v1053_v33 = vadd.f32 %v2157_v25, %v2142_v48 }
 0x406   : > { %v1050_v8 = vadd.f32 %v2157_v25, %v2140_v14 }
 0x407   : > { %1111 = vmatmul.f32.gmra.mxu1 %v982_v11 }
 0x40c   : > { %v984_v6 = vpop.f32.mrf.mxu0  ;;  %v2152_v13 = vpop.f32.mrf.mxu1 }
 0x40d   : > { %v985_v34 = vadd.f32 %v984_v6, %v871_v4  ;;  %v1068_v29 = vadd.f32 %v2157_v25, %v2152_v13  ;;  %v1059_v6 = vadd.f32 %v2157_v25, %v2146_v3  ;;  %v1056_v13 = vadd.f32 %v2157_v25, %v2144_v24 }
 0x40e   : > { %v1047_v3 = vadd.f32 %v2157_v25, %v2138_v44  ;;  %v1143_v24 = vmax.f32 %v1050_v8, 0.0  ;;  %v1231_v8 = vld [vmem:[%s2311_s3 + $0xc0] sm:$0xff] }
 0x40f   : > { %1114 = vmatmul.f32.gmra.mxu1 %v985_v34  ;;  %v1149_v11 = vmax.f32 %v1068_v29, 0.0  ;;  %v1148_v34 = vmax.f32 %v1065_v7, 0.0 }
 0x414   : > { %v987_v36 = vpop.f32.mrf.mxu0  ;;  %v1070_v30 = vpop.f32.mrf.mxu1 }
 0x415   : > { %v988_v17 = vadd.f32 %v987_v36, %v874_v32  ;;  %v1071_v12 = vadd.f32 %v2157_v25, %v1070_v30  ;;  %v1146_v30 = vmax.f32 %v1059_v6, 0.0 }
 0x417   : > { %1117 = vmatmul.f32.gmra.mxu1 %v988_v17  ;;  %v1150_v32 = vmax.f32 %v1071_v12, 0.0  ;;  %v1145_v17 = vmax.f32 %v1056_v13, 0.0  ;;  %v1236_v12 = vld [vmem:[%s2311_s3 + $0xe8] sm:$0xff] }
 0x41c   : > { %v990_v40 = vpop.f32.mrf.mxu0  ;;  %v1073_v19 = vpop.f32.mrf.mxu1 }
 0x41d   : > { %v991_v21 = vadd.f32 %v990_v40, %v877_v15  ;;  %v1074_v2 = vadd.f32 %v2157_v25, %v1073_v19  ;;  %v1147_v15 = vmax.f32 %v1062_v9, 0.0  ;;  %v1142_v19 = vmax.f32 %v1047_v3, 0.0  ;;  %v1234_v9 = vld [vmem:[%s2311_s3 + $0xd8] sm:$0xff] }
 0x41f   : > { %1120 = vmatmul.f32.gmra.mxu1 %v991_v21  ;;  %v1151_v4 = vmax.f32 %v1074_v2, 0.0 }
 0x424   : > { %v993_v49 = vpop.f32.mrf.mxu0  ;;  %v1076_v51 = vpop.f32.mrf.mxu1 }
 0x425   : > { %v994_v41 = vadd.f32 %v993_v49, %v880_v38  ;;  %v1077_v50 = vadd.f32 %v2157_v25, %v1076_v51  ;;  %v1144_v38 = vmax.f32 %v1053_v33, 0.0  ;;  %v1232_v33 = vld [vmem:[%s2311_s3 + $0xc8] sm:$0xff] }
 0x427   : > { %1123 = vmatmul.f32.gmra.mxu1 %v994_v41  ;;  %v1152_v37 = vmax.f32 %v1077_v50, 0.0 }
 0x42c   : > { %v996_v56 = vpop.f32.mrf.mxu0  ;;  %v1079_v47 = vpop.f32.mrf.mxu1 }
 0x42d   : > { %v997_v53 = vadd.f32 %v996_v56, %v883_v45  ;;  %v1080_v16 = vadd.f32 %v2157_v25, %v1079_v47 }
 0x42f   : > { %1126 = vmatmul.f32.gmra.mxu1 %v997_v53  ;;  %v1153_v59 = vmax.f32 %v1080_v16, 0.0  ;;  %v1238_v16 = vld [vmem:[%s2311_s3 + $0xf8] sm:$0xff] }
 0x434   : > { %v999_v43 = vpop.f32.mrf.mxu0  ;;  %v1082_v60 = vpop.f32.mrf.mxu1 }
 0x435   : > { %v1000_v23 = vadd.f32 %v999_v43, %v886_v55  ;;  %v1083_v63 = vadd.f32 %v2157_v25, %v1082_v60 }
 0x437   : > { %1129 = vmatmul.f32.gmra.mxu1 %v1000_v23  ;;  %v1154_v1 = vmax.f32 %v1083_v63, 0.0 }
 0x43c   : > { %v1002_v58 = vpop.f32.mrf.mxu0  ;;  %v1085_v61 = vpop.f32.mrf.mxu1 }
 0x43d   : > { %v1003_v62 = vadd.f32 %v1002_v58, %v889_v39  ;;  %v1086_v22 = vadd.f32 %v2157_v25, %v1085_v61  ;;  %v1174_v58 = vld [vmem:[%s2310_s2] sm:$0xff] }
 0x43f   : > { %1132 = vmatmul.f32.gmra.mxu1 %v1003_v62  ;;  %v1155_v27 = vmax.f32 %v1086_v22, 0.0 }
 0x444   : > { %v1005_v35 = vpop.f32.mrf.mxu0  ;;  %v1088_v54 = vpop.f32.mrf.mxu1 }
 0x445   : > { %v1006_v31 = vadd.f32 %v1005_v35, %v892_v0  ;;  %v1089_v18 = vadd.f32 %v2157_v25, %v1088_v54 }
 0x447   : > { %1135 = vmatmul.f32.gmra.mxu1 %v1006_v31  ;;  %v1156_v10 = vmax.f32 %v1089_v18, 0.0  ;;  %v1241_v18 = vld [vmem:[%s2311_s3 + $0x110] sm:$0xff] }
 0x44c   : > { %v1008_v52 = vpop.f32.mrf.mxu0  ;;  %v1091_v42 = vpop.f32.mrf.mxu1 }
 0x44d   : > { %v1009_v57 = vadd.f32 %v1008_v52, %v895_v46  ;;  %v1092_v26 = vadd.f32 %v2157_v25, %v1091_v42  ;;  %v1176_v46 = vld [vmem:[%s2310_s2 + $0x10] sm:$0xff] }
 0x44f   : > { %v1157_v28 = vmax.f32 %v1092_v26, 0.0  ;;  %1138 = vmatmul.f32.gmra.mxu1 %v1009_v57  ;;  %v1240_v57 = vld [vmem:[%s2311_s3 + $0x108] sm:$0xff] }
 0x451   : > { %1178 = vmatpush.msra.mxu2 %v1157_v28  ;;  %v1239_v28 = vld [vmem:[%s2311_s3 + $0x100] sm:$0xff] }
 0x453   : > { %1179 = vmatpush.msra.mxu2 %v1156_v10 }
 0x454   : > { %v2164_v20 = vpop.f32.mrf.mxu1 }
 0x455   : > { %1180 = vmatpush.msra.mxu2 %v1155_v27 }
 0x457   : > { %1181 = vmatpush.msra.mxu2 %v1154_v1  ;;  %v1237_v1 = vld [vmem:[%s2311_s3 + $0xf0] sm:$0xff] }
 0x459   : > { %1182 = vmatpush.msra.mxu2 %v1153_v59 }
 0x45b   : > { %1183 = vmatpush.msra.mxu2 %v1152_v37 }
 0x45c   : > { %v2171_v5 = vpop.f32.mrf.mxu1 }
 0x45d   : > { %1184 = vmatpush.msra.mxu2 %v1151_v4  ;;  %v1235_v4 = vld [vmem:[%s2311_s3 + $0xe0] sm:$0xff]  ;;  %v1098_v13 = vadd.f32 %v2157_v25, %v2171_v5  ;;  %v1230_v5 = vld [vmem:[%s2311_s3 + $0xb8] sm:$0xff] }
 0x45f   : > { %1185 = vmatpush.msra.mxu2 %v1150_v32 }
 0x461   : > { %1186 = vmatpush.msra.mxu2 %v1149_v11 }
 0x463   : > { %1187 = vmatpush.msra.mxu2 %v1148_v34  ;;  %v1233_v34 = vld [vmem:[%s2311_s3 + $0xd0] sm:$0xff] }
 0x464   : > { %v2181_v36 = vpop.f32.mrf.mxu1 }
 0x465   : > { %1188 = vmatpush.msra.mxu2 %v1147_v15  ;;  %v1101_v11 = vadd.f32 %v2157_v25, %v2181_v36  ;;  %v1095_v36 = vadd.f32 %v2157_v25, %v2164_v20  ;;  %v1229_v20 = vld [vmem:[%s2311_s3 + $0xb0] sm:$0xff] }
 0x467   : > { %1189 = vmatpush.msra.mxu2 %v1146_v30  ;;  %v1160_v30 = vmax.f32 %v1101_v11, 0.0  ;;  %v1158_v3 = vmax.f32 %v1095_v36, 0.0 }
 0x469   : > { %1190 = vmatpush.msra.mxu2 %v1145_v17  ;;  %v1159_v17 = vmax.f32 %v1098_v13, 0.0 }
 0x46b   : > { %1191 = vmatpush.msra.mxu2 %v1144_v38  ;;  %v1177_v38 = vld [vmem:[%s2310_s2 + $0x18] sm:$0xff] }
 0x46c   : > { %v2189_v40 = vpop.f32.mrf.mxu1 }
 0x46d   : > { %1192 = vmatpush.msra.mxu2 %v1143_v24  ;;  %v1104_v7 = vadd.f32 %v2157_v25, %v2189_v40  ;;  %v1228_v24 = vld [vmem:[%s2311_s3 + $0xa8] sm:$0xff]  ;;  %v1227_v40 = vld [vmem:[%s2311_s3 + $0xa0] sm:$0xff] }
 0x46f   : > { %1193 = vmatpush.msra.mxu2 %v1142_v19  ;;  %v1161_v15 = vmax.f32 %v1104_v7, 0.0  ;;  %v1226_v19 = vld [vmem:[%s2311_s3 + $0x98] sm:$0xff] }
 0x470   : > { %1194 = vmatmul.f32.vlgmr.msra.gmra.mxu2 %v1174_v58  ;;  %v1495_v58 = vld [vmem:[%s2311_s3 + $0x118] ss:$0 sm:$0xff] }
 0x471   : > { %1244 = vmatpush.msrb.mxu2 %v1241_v18 }
 0x473   : > { %1245 = vmatpush.msrb.mxu2 %v1240_v57 }
 0x474   : > { %v1106_v48 = vpop.f32.mrf.mxu1 }
 0x475   : > { %1246 = vmatpush.msrb.mxu2 %v1239_v28  ;;  %v1107_v37 = vadd.f32 %v2157_v25, %v1106_v48  ;;  %v1276_v48 = vld [vmem:[%s2311_s3 + $0x158] sm:$0xff] }
 0x477   : > { %1247 = vmatpush.msrb.mxu2 %v1238_v16  ;;  %v1162_v6 = vmax.f32 %v1107_v37, 0.0 }
 0x478   : > { %1197 = vmatmul.f32.gmra.mxu2 %v1176_v46  ;;  %v1496_v46 = vld [vmem:[%s2311_s3 + $0x160] ss:$0 sm:$0xff] }
 0x479   : > { %1248 = vmatpush.msrb.mxu2 %v1237_v1 }
 0x47b   : > { %1249 = vmatpush.msrb.mxu2 %v1236_v12 }
 0x47c   : > { %v1109_v21 = vpop.f32.mrf.mxu1 }
 0x47d   : > { %v1110_v2 = vadd.f32 %v2157_v25, %v1109_v21  ;;  %1250 = vmatpush.msrb.mxu2 %v1235_v4  ;;  %v1275_v21 = vld [vmem:[%s2311_s3 + $0x150] sm:$0xff] }
 0x47f   : > { %v1163_v32 = vmax.f32 %v1110_v2, 0.0  ;;  %1251 = vmatpush.msrb.mxu2 %v1234_v9 }
 0x481   : > { %1252 = vmatpush.msrb.mxu2 %v1233_v34 }
 0x483   : > { %1253 = vmatpush.msrb.mxu2 %v1232_v33 }
 0x484   : > { %v1112_v45 = vpop.f32.mrf.mxu1 }
 0x485   : > { %v1113_v27 = vadd.f32 %v2157_v25, %v1112_v45  ;;  %1254 = vmatpush.msrb.mxu2 %v1231_v8  ;;  %v1274_v45 = vld [vmem:[%s2311_s3 + $0x148] sm:$0xff] }
 0x487   : > { %v1164_v29 = vmax.f32 %v1113_v27, 0.0  ;;  %1255 = vmatpush.msrb.mxu2 %v1230_v5 }
 0x489   : > { %1256 = vmatpush.msrb.mxu2 %v1229_v20 }
 0x48b   : > { %1257 = vmatpush.msrb.mxu2 %v1228_v24 }
 0x48c   : > { %v1115_v49 = vpop.f32.mrf.mxu1 }
 0x48d   : > { %v1116_v63 = vadd.f32 %v2157_v25, %v1115_v49  ;;  %1258 = vmatpush.msrb.mxu2 %v1227_v40  ;;  %v1273_v49 = vld [vmem:[%s2311_s3 + $0x140] sm:$0xff] }
 0x48f   : > { %v1165_v59 = vmax.f32 %v1116_v63, 0.0  ;;  %1259 = vmatpush.msrb.mxu2 %v1226_v19 }
 0x494   : > { %v1118_v51 = vpop.f32.mrf.mxu1 }
 0x495   : > { %v1119_v26 = vadd.f32 %v2157_v25, %v1118_v51  ;;  %v1272_v51 = vld [vmem:[%s2311_s3 + $0x138] sm:$0xff] }
 0x497   : > { %v1166_v50 = vmax.f32 %v1119_v26, 0.0 }
 0x49c   : > { %v1121_v14 = vpop.f32.mrf.mxu1 }
 0x49d   : > { %v1122_v52 = vadd.f32 %v2157_v25, %v1121_v14 }
 0x49f   : > { %v1167_v10 = vmax.f32 %v1122_v52, 0.0 }
 0x4a4   : > { %v1124_v41 = vpop.f32.mrf.mxu1 }
 0x4a5   : > { %v1125_v54 = vadd.f32 %v2157_v25, %v1124_v41 }
 0x4a7   : > { %v1168_v22 = vmax.f32 %v1125_v54, 0.0 }
 0x4ac   : > { %v1127_v55 = vpop.f32.mrf.mxu1 }
 0x4ad   : > { %v1128_v0 = vadd.f32 %v2157_v25, %v1127_v55 }
 0x4af   : > { %v1169_v42 = vmax.f32 %v1128_v0, 0.0 }
 0x4b4   : > { %v1130_v56 = vpop.f32.mrf.mxu1 }
 0x4b5   : > { %v1131_v61 = vadd.f32 %v2157_v25, %v1130_v56 }
 0x4b7   : > { %v1170_v31 = vmax.f32 %v1131_v61, 0.0 }
 0x4bc   : > { %v1133_v47 = vpop.f32.mrf.mxu1 }
 0x4bd   : > { %v1134_v23 = vadd.f32 %v2157_v25, %v1133_v47 }
 0x4bf   : > { %v1171_v35 = vmax.f32 %v1134_v23, 0.0  ;;  %v1270_v23 = vld [vmem:[%s2311_s3 + $0x128] sm:$0xff] }
 0x4c4   : > { %v1136_v44 = vpop.f32.mrf.mxu1 }
 0x4c5   : > { %v1137_v43 = vadd.f32 %v2157_v25, %v1136_v44 }
 0x4c7   : > { %v1172_v62 = vmax.f32 %v1137_v43, 0.0 }
 0x4cc   : > { %v1139_v53 = vpop.f32.mrf.mxu1 }
 0x4cd   : > { %v1140_v60 = vadd.f32 %v2157_v25, %v1139_v53  ;;  %v1175_v25 = vld [vmem:[%s2310_s2 + $0x8] sm:$0xff] }
 0x4cf   : > { %v1173_v39 = vmax.f32 %v1140_v60, 0.0  ;;  %v1271_v60 = vld [vmem:[%s2311_s3 + $0x130] sm:$0xff] }
 0x4d1   : > { %1201 = vmatpush.msra.mxu3 %v1173_v39  ;;  %v1269_v39 = vld [vmem:[%s2311_s3 + $0x120] sm:$0xff] }
 0x4d3   : > { %1202 = vmatpush.msra.mxu3 %v1172_v62 }
 0x4d5   : > { %1203 = vmatpush.msra.mxu3 %v1171_v35 }
 0x4d7   : > { %1204 = vmatpush.msra.mxu3 %v1170_v31 }
 0x4d9   : > { %1205 = vmatpush.msra.mxu3 %v1169_v42 }
 0x4db   : > { %1206 = vmatpush.msra.mxu3 %v1168_v22 }
 0x4dd   : > { %1207 = vmatpush.msra.mxu3 %v1167_v10 }
 0x4df   : > { %1208 = vmatpush.msra.mxu3 %v1166_v50 }
 0x4e1   : > { %1209 = vmatpush.msra.mxu3 %v1165_v59 }
 0x4e3   : > { %1210 = vmatpush.msra.mxu3 %v1164_v29 }
 0x4e5   : > { %1211 = vmatpush.msra.mxu3 %v1163_v32 }
 0x4e7   : > { %1212 = vmatpush.msra.mxu3 %v1162_v6 }
 0x4e9   : > { %1213 = vmatpush.msra.mxu3 %v1161_v15 }
 0x4eb   : > { %1214 = vmatpush.msra.mxu3 %v1160_v30 }
 0x4ed   : > { %1215 = vmatpush.msra.mxu3 %v1159_v17 }
 0x4ef   : > { %1216 = vmatpush.msra.mxu3 %v1158_v3 }
 0x4f0   : > { %1217 = vmatmul.f32.vlgmr.msra.gmra.mxu3 %v1175_v25 }
 0x4f1   : > { %1294 = vmatpush.msrb.mxu3 %v1276_v48 }
 0x4f3   : > { %1295 = vmatpush.msrb.mxu3 %v1275_v21  ;;  %v1195_v14 = vpop.f32.mrf.mxu2 }
 0x4f5   : > { %1296 = vmatpush.msrb.mxu3 %v1274_v45 }
 0x4f7   : > { %1297 = vmatpush.msrb.mxu3 %v1273_v49 }
 0x4f8   : > { %1220 = vmatmul.f32.gmra.mxu3 %v1177_v38 }
 0x4f9   : > { %1298 = vmatpush.msrb.mxu3 %v1272_v51 }
 0x4fb   : > { %v1198_v47 = vpop.f32.mrf.mxu2  ;;  %1299 = vmatpush.msrb.mxu3 %v1271_v60 }
 0x4fd   : > { %1300 = vmatpush.msrb.mxu3 %v1270_v23 }
 0x4ff   : > { %1301 = vmatpush.msrb.mxu3 %v1269_v39 }
 0x573   : > { %v1218_v41 = vpop.f32.mrf.mxu3 }
 0x574   : > { %v1219_v55 = vadd.f32 %v1218_v41, %v1195_v14 }
 0x576   : > { %v1224_v56 = vand.u32 2147483647, %v1219_v55 }
 0x578   : > { %1260 = vmatmul.f32.vlgmr.msrb.gmra.mxu2 %v1224_v56 }
 0x57b   : > { %v1221_v44 = vpop.f32.mrf.mxu3 }
 0x57c   : > { %v1222_v53 = vadd.f32 %v1221_v44, %v1198_v47 }
 0x57e   : > { %v1225_v43 = vand.u32 2147483647, %v1222_v53 }
 0x580   : > { %1263 = vmatmul.f32.gmra.mxu2 %v1225_v43 }
 0x5fb   : > { %v1261_v61 = vpop.f32.mrf.mxu2 }
 0x5fc   : > { %v1262_v62 = vadd.f32 %v1495_v58, %v1261_v61 }
 0x5fe   : > { %v1267_v0 = vmax.f32 %v1262_v62, 0.0 }
 0x600   : > { %1459 = vmatmul.msk.f32.vlgmr.msrb.gmra.mxu3 %vm1279_vm1, %v1267_v0 }
 0x603   : > { %v1264_v35 = vpop.f32.mrf.mxu2 }
 0x604   : > { %v1265_v54 = vadd.f32 %v1495_v58, %v1264_v35 }
 0x606   : > { %v1268_v31 = vmax.f32 %v1265_v54, 0.0 }
 0x608   : > { %1460 = vmatmul.msk.f32.gmra.mxu3 %vm1279_vm1, %v1268_v31 }
 0x683   : > { %v1303_v52 = vpop.f32.mrf.mxu3 }
 0x684   : > { %v1304_v42 = vadd.f32 %v1496_v46, %v1303_v52 }
 0x686   : > { %v1461_v18 = vmul.f32 -1.442695, %v1304_v42 }
 0x688   : > { %1497 = vpow2.f32 %v1461_v18 }
 0x68b   : > { %v1306_v57 = vpop.f32.mrf.mxu3 }
 0x68c   : > { %v1307_v26 = vadd.f32 %v1496_v46, %v1306_v57 }
 0x68e   : > { %v1498_v22 = vpop.eup %1497  ;;  %v1462_v28 = vmul.f32 -1.442695, %v1307_v26 }
 0x68f   : > { %v1315_v63 = vadd.f32 1.0, %v1498_v22 }
 0x690   : > { %1499 = vpow2.f32 %v1462_v28 }
 0x691   : > { %1501 = vrcp.f32 %v1315_v63  ;;  %v1328_v2 = vand.u32 2147483648, %v1315_v63  ;;  %v1326_v12 = vand.u32 2147483647, %v1315_v63  ;;  %vm1322_vm3 = vweird.f32 %v1315_v63 }
 0x693   : > { %v1329_v4 = vor.u32 1.1754944e-38, %v1328_v2  ;;  %vm1327_vm5 = vcmp.eq.f32.partialorder %v1326_v12, 8.507059e+37 }
 0x696   : > { %v1500_v10 = vpop.eup %1499 }
 0x697   : > { %v1502_v16 = vpop.eup %1501  ;;  %v1316_v27 = vadd.f32 1.0, %v1500_v10 }
 0x698   : > { %v1318_v50 = vmul.f32 %v1502_v16, %v1315_v63  ;;  %vm1323_vm2 = vweird.f32 %v1502_v16 }
 0x699   : > { %1503 = vrcp.f32 %v1316_v27  ;;  %vm1324_vm4 = vmor %vm1322_vm3, %vm1323_vm2  ;;  %v1343_v6 = vand.u32 2147483648, %v1316_v27  ;;  %v1341_v13 = vand.u32 2147483647, %v1316_v27  ;;  %vm1337_vm7 = vweird.f32 %v1316_v27 }
 0x69a   : > { %v1319_v1 = vsub.f32 1.0, %v1318_v50 }
 0x69b   : > { %v1344_v33 = vor.u32 1.1754944e-38, %v1343_v6  ;;  %vm1342_vm9 = vcmp.eq.f32.partialorder %v1341_v13, 8.507059e+37 }
 0x69c   : > { %v1320_v59 = vmul.f32 %v1502_v16, %v1319_v1 }
 0x69e   : > { %v1321_v37 = vadd.f32 %v1502_v16, %v1320_v59 }
 0x69f   : > { %v1504_v29 = vpop.eup %1503 }
 0x6a0   : > { %v1325_v7 = vsel %vm1324_vm4, %v1502_v16, %v1321_v37  ;;  %v1333_v32 = vmul.f32 %v1504_v29, %v1316_v27  ;;  %vm1338_vm6 = vweird.f32 %v1504_v29 }
 0x6a1   : > { %v1330_v9 = vsel %vm1327_vm5, %v1329_v4, %v1325_v7  ;;  %vm1339_vm8 = vmor %vm1337_vm7, %vm1338_vm6 }
 0x6a2   : > { %1347 = vst [vmem:[%s217_s30] sm:$0xff] %v1330_v9  ;;  %v1334_v11 = vsub.f32 1.0, %v1333_v32 }
 0x6a4   : > { %v1335_v34 = vmul.f32 %v1504_v29, %v1334_v11 }
 0x6a6   : > { %v1336_v15 = vadd.f32 %v1504_v29, %v1335_v34 }
 0x6a8   : > { %v1340_v36 = vsel %vm1339_vm8, %v1504_v29, %v1336_v15 }
 0x6a9   : > { %v1345_v30 = vsel %vm1342_vm9, %v1344_v33, %v1340_v36 }
 0x6aa   : > { %1348 = vst [vmem:[%s217_s30 + $0x8] sm:$0xff] %v1345_v30 }
 0x6ab PF: > { %s14_s15 = sadd.s32 1, %s1511_s15  }
 0x6ac   : > { %p11_p4 = scmp.ge.s32.totalorder %s14_s15, 4  }
 0x6ae   :  { %13 = sbr.rel (!%p11_p4) target bundleno = 1 (0x1), region = 69 }

</bundles_post_ra>
